<compile_context>
chip_gen: v7x
topology: tpu7x:2x2x1
jax: 0.10.0
libtpu: 0.0.40
codegen_flags: <defaults>
</compile_context>

<pallas_src>
import functools

import jax
import jax.numpy as jnp
from jax.experimental import pallas as pl
from jax.experimental.pallas import tpu as pltpu


# ----------------------------- synthetic args -------------------------------
class Args:
    comm_shape = 16          # vocabulary size (one-hot width)
    encode_size = 32         # embedding dim
    hidden_size = 32         # conv / GRU hidden dim
    encode_comm_size = 16    # output dim
    max_comm_len = 8         # padded sequence length


ARGS = Args()
BN_EPS = 1e-5
GATE = 128                   # GRU gate dim 3*H = 96 padded to 128 lanes


# ------------------------------- the kernel ---------------------------------
def comm_in_kernel(idx_ref,      # (TN, L*V=128) int32  combined one-hot indices
                   w_emb_ref,    # (128, L*ENC=256) bf16 block-diag embedding
                   w_cnn_ref,    # (256, L*H=256)   bf16 block-diag conv(k=1), BN1/BN2 folded
                   b_cnn_ref,    # (1, 256) f32
                   w_gi_ref,     # (256, L*128=1024) bf16 block-diag GRU W_ih (gate dim padded)
                   b_gi_ref,     # (1, 1024) f32
                   w_hh_ref,     # (H, 128) bf16 GRU W_hh (gate dim padded)
                   w_lin_ref,    # (H, C)   bf16 comm_lin, BN4 folded
                   vecs_ref,     # (8, 128) f32: row0 bhh, row1 bn3s, row2 bn3b, row3 blin
                   alphas_ref,   # (4,) f32 in SMEM: PReLU alphas
                   out_ref):     # (TN, C) f32
    TN, LV = idx_ref.shape
    H = w_hh_ref.shape[0]
    C = out_ref.shape[1]
    L = w_gi_ref.shape[1] // GATE

    # PReLU alphas as SMEM scalars (free sreg splats, no XLU lane broadcast).
    a_emb = alphas_ref[0]
    a_cnn = alphas_ref[1]
    a_lin = alphas_ref[2]
    a_out = alphas_ref[3]

    def prelu(x, a):
        return jnp.where(x >= 0, x, x * a)

    # ---- lane-packed one-hot: one full-vreg compare, built directly in bf16.
    #      idx[n, t*V + v] == t*V + token[n, t]  ->  oh is 1 exactly at the
    #      token lane of each 16-lane timestep group.
    lane = jax.lax.broadcasted_iota(jnp.int32, (TN, LV), 1)
    oh = (idx_ref[...] == lane).astype(jnp.bfloat16)            # (TN, 128)

    # ---- embedding (block-diag matmul on MXU) + PReLU; Dropout = identity --
    e = prelu(jnp.dot(oh, w_emb_ref[...],
                      preferred_element_type=jnp.float32), a_emb)        # (TN, 256)

    # ---- comm_cnn: BN1 -> Conv1d(k=1) -> BN2 folded into w_cnn/b_cnn -------
    c = prelu(jnp.dot(e.astype(jnp.bfloat16), w_cnn_ref[...],
                      preferred_element_type=jnp.float32) + b_cnn_ref[...],
              a_cnn)                                                      # (TN, 256)

    # ---- GRU input projection for ALL timesteps in one matmul --------------
    gi = jnp.dot(c.astype(jnp.bfloat16), w_gi_ref[...],
                 preferred_element_type=jnp.float32) + b_gi_ref[...]      # (TN, 1024)

    # ---- GRU recurrence (PyTorch gate order r, z, n; h0 = 0) ---------------
    bhh = vecs_ref[0:1, :]                                                # (1, 128)
    whh = w_hh_ref[...]                                                   # (H, 128)
    h = jnp.zeros((TN, H), jnp.float32)
    for t in range(L):                      # L small & static -> unrolled
        gi_t = gi[:, t * GATE:(t + 1) * GATE]      # vreg-aligned 128-lane slice
        gh = jnp.dot(h.astype(jnp.bfloat16), whh,
                     preferred_element_type=jnp.float32) + bhh            # (TN, 128)
        rz = jax.nn.sigmoid(gi_t[:, :2 * H] + gh[:, :2 * H])              # r,z together
        r = rz[:, :H]
        z = rz[:, H:2 * H]
        n = jnp.tanh(gi_t[:, 2 * H:3 * H] + r * gh[:, 2 * H:3 * H])
        h = (1.0 - z) * n + z * h
    # Only the last timestep survives comm[:, :, -1] downstream; BN/Linear are
    # per-position, so only the final hidden state is needed.

    # ---- batchnorm_1 -> PReLU -> Linear (BN4 folded) -> PReLU --------------
    bn3s = vecs_ref[1:2, :H]
    bn3b = vecs_ref[2:3, :H]
    blin = vecs_ref[3:4, :C]
    g = prelu(h * bn3s + bn3b, a_lin)
    y = jnp.dot(g.astype(jnp.bfloat16), w_lin_ref[...],
                preferred_element_type=jnp.float32) + blin                # (TN, C)
    out_ref[...] = prelu(y, a_out)


# ------------------------------ parameter init -------------------------------
def fold_bn(gamma, beta, mean, var):
    scale = gamma / jnp.sqrt(var + BN_EPS)
    shift = beta - mean * scale
    return scale.reshape(1, -1), shift.reshape(1, -1)


def make_params(key, args):
    V, ENC, H, C = args.comm_shape, args.encode_size, args.hidden_size, args.encode_comm_size
    ks = jax.random.split(key, 16)
    p = {}
    p["emb"] = 0.1 * jax.random.normal(ks[0], (V, ENC), jnp.float32)

    def bn(k, dim):
        k1, k2, k3, k4 = jax.random.split(k, 4)
        gamma = 1.0 + 0.1 * jax.random.normal(k1, (dim,), jnp.float32)
        beta = 0.1 * jax.random.normal(k2, (dim,), jnp.float32)
        mean = 0.1 * jax.random.normal(k3, (dim,), jnp.float32)
        var = jax.random.uniform(k4, (dim,), jnp.float32, 0.5, 1.5)
        return fold_bn(gamma, beta, mean, var)

    p["bn1s"], p["bn1b"] = bn(ks[1], ENC)
    # Conv1d(ENC -> H, k=1): PyTorch weight (H, ENC, 1) -> (ENC, H)
    p["wc"] = (0.1 * jax.random.normal(ks[2], (H, ENC), jnp.float32)).T
    p["bc"] = (0.1 * jax.random.normal(ks[3], (H,), jnp.float32)).reshape(1, H)
    p["bn2s"], p["bn2b"] = bn(ks[4], H)
    # GRU: PyTorch weight_ih_l0 (3H, H) -> (H, 3H), gate order r,z,n
    p["wih"] = (0.1 * jax.random.normal(ks[5], (3 * H, H), jnp.float32)).T
    p["bih"] = (0.1 * jax.random.normal(ks[6], (3 * H,), jnp.float32)).reshape(1, 3 * H)
    p["whh"] = (0.1 * jax.random.normal(ks[7], (3 * H, H), jnp.float32)).T
    p["bhh"] = (0.1 * jax.random.normal(ks[8], (3 * H,), jnp.float32)).reshape(1, 3 * H)
    p["bn3s"], p["bn3b"] = bn(ks[9], H)
    # Linear(H -> C): PyTorch weight (C, H) -> (H, C)
    p["wlin"] = (0.1 * jax.random.normal(ks[10], (C, H), jnp.float32)).T
    p["blin"] = (0.1 * jax.random.normal(ks[11], (C,), jnp.float32)).reshape(1, C)
    p["bn4s"], p["bn4b"] = bn(ks[12], C)
    # PReLU alphas (nn.PReLU default single parameter = 0.25) x 4 modules
    p["alphas"] = jnp.array([0.25, 0.25, 0.25, 0.25], jnp.float32)
    return p


def pack_params(p, args):
    """Fold BN affines, build block-diagonal (timestep-lane-packed) weights."""
    V, ENC = args.comm_shape, args.encode_size
    H, C, L = args.hidden_size, args.encode_comm_size, args.max_comm_len
    assert L * V == 128 and 3 * H <= GATE and ENC <= 128 and C <= 128

    bn1s, bn1b = p["bn1s"].reshape(ENC), p["bn1b"].reshape(ENC)
    bn2s, bn2b = p["bn2s"].reshape(H), p["bn2b"].reshape(H)
    bn4s, bn4b = p["bn4s"].reshape(C), p["bn4b"].reshape(C)

    # BN1 -> Conv1d(k=1) -> BN2 folded into a single affine matmul.
    wc = bn1s[:, None] * p["wc"] * bn2s[None, :]                          # (ENC, H)
    bc = (bn1b[None, :] @ p["wc"]) * bn2s[None, :] + p["bc"] * bn2s[None, :] + bn2b[None, :]
    # Linear -> BN4 folded.
    wlin = p["wlin"] * bn4s[None, :]                                      # (H, C)
    blin = p["blin"] * bn4s[None, :] + bn4b[None, :]                      # (1, C)

    # GRU weights / biases, gate dim padded 96 -> 128 lanes.
    wih = jnp.zeros((H, GATE), jnp.float32).at[:, :3 * H].set(p["wih"])
    whh = jnp.zeros((H, GATE), jnp.float32).at[:, :3 * H].set(p["whh"])
    bih = jnp.zeros((GATE,), jnp.float32).at[:3 * H].set(p["bih"].reshape(3 * H))
    bhh = jnp.zeros((GATE,), jnp.float32).at[:3 * H].set(p["bhh"].reshape(3 * H))

    def block_diag(w, n):
        a, b = w.shape
        out = jnp.zeros((n * a, n * b), w.dtype)
        for t in range(n):
            out = out.at[t * a:(t + 1) * a, t * b:(t + 1) * b].set(w)
        return out

    w_emb = block_diag(p["emb"], L)            # (L*V, L*ENC) = (128, 256)
    w_cnn = block_diag(wc, L)                  # (L*ENC, L*H) = (256, 256)
    w_gi = block_diag(wih, L)                  # (L*H, L*128) = (256, 1024)
    b_cnn = jnp.tile(bc.reshape(1, H), (1, L))         # (1, 256)
    b_gi = jnp.tile(bih.reshape(1, GATE), (1, L))       # (1, 1024)

    # One (8, 128) table for the remaining small per-channel vectors.
    vecs = jnp.zeros((8, 128), jnp.float32)
    vecs = vecs.at[0, :].set(bhh)
    vecs = vecs.at[1, :H].set(p["bn3s"].reshape(H))
    vecs = vecs.at[2, :H].set(p["bn3b"].reshape(H))
    vecs = vecs.at[3, :C].set(blin.reshape(C))

    return {
        "w_emb": w_emb.astype(jnp.bfloat16),
        "w_cnn": w_cnn.astype(jnp.bfloat16),
        "b_cnn": b_cnn,
        "w_gi": w_gi.astype(jnp.bfloat16),
        "b_gi": b_gi,
        "w_hh": whh.astype(jnp.bfloat16),
        "w_lin": wlin.astype(jnp.bfloat16),
        "vecs": vecs,
        "alphas": p["alphas"],                 # (4,) f32 -> SMEM
    }


# --------------------------------- wrapper -----------------------------------
def _round_up(x, m):
    return (x + m - 1) // m * m


@functools.partial(jax.jit, static_argnums=(2,))
def comm_in_forward(comm, packed, args=ARGS):
    # Mirror PyTorch shape handling: 2D -> (1, L, V); 3D -> (1, steps, L, V)
    if comm.ndim == 2:
        comm = comm[None]
    if comm.ndim == 3:
        comm = comm[:, None]
    episodes, steps = comm.shape[0], comm.shape[1]
    L_in, V = comm.shape[2], comm.shape[3]
    L = args.max_comm_len
    C = args.encode_comm_size
    N = episodes * steps

    comm = comm.reshape(N, L_in, V)
    comm = jnp.pad(comm, ((0, 0), (0, L - L_in), (0, 0)))        # pad_zeros
    tokens = jnp.argmax(comm, axis=-1).astype(jnp.int32)         # (N, L) int32
    # Combined lane index per (row, timestep): t*V + token, repeated across its
    # 16-lane group -> a single lane-dense (N, 128) int32 input; the kernel
    # turns it into the packed one-hot with one compare.
    comb = tokens + (jnp.arange(L, dtype=jnp.int32) * V)[None, :]  # (N, L)
    idx = jnp.repeat(comb, V, axis=1)                              # (N, L*V = 128)

    # N-tiling: >=2 blocks for medium/large N (v7x has 2 TensorCores), tile
    # capped at 512 rows (~6 MiB live/tile -> fits v5e's 16 MiB default scoped
    # VMEM; raise vmem_limit_bytes before sweeping TN past 512 on v6e).
    N8 = _round_up(max(N, 1), 8)
    if N8 <= 256:
        TN = N8
    else:
        TN = min(512, _round_up((N8 + 1) // 2, 8))
    N_pad = _round_up(N8, TN)
    idx = jnp.pad(idx, ((0, N_pad - N), (0, 0)))
    nb = N_pad // TN

    # NOTE: weight inputs use constant index maps and stay VMEM-resident;
    # pipeline_mode=pl.Buffered(1) would shave their double buffers (<1 MiB),
    # left off for compile-compatibility.
    out = pl.pallas_call(
        comm_in_kernel,
        out_shape=jax.ShapeDtypeStruct((N_pad, C), jnp.float32),
        grid=(nb,),
        in_specs=[
            pl.BlockSpec((TN, L * V), lambda i: (i, 0)),             # idx: tiled on N
            pl.BlockSpec(packed["w_emb"].shape, lambda i: (0, 0)),   # weights: resident
            pl.BlockSpec(packed["w_cnn"].shape, lambda i: (0, 0)),
            pl.BlockSpec(packed["b_cnn"].shape, lambda i: (0, 0)),
            pl.BlockSpec(packed["w_gi"].shape, lambda i: (0, 0)),
            pl.BlockSpec(packed["b_gi"].shape, lambda i: (0, 0)),
            pl.BlockSpec(packed["w_hh"].shape, lambda i: (0, 0)),
            pl.BlockSpec(packed["w_lin"].shape, lambda i: (0, 0)),
            pl.BlockSpec(packed["vecs"].shape, lambda i: (0, 0)),
            pl.BlockSpec(memory_space=pltpu.MemorySpace.SMEM),       # PReLU alphas
        ],
        out_specs=pl.BlockSpec((TN, C), lambda i: (i, 0)),
        compiler_params=pltpu.CompilerParams(
            dimension_semantics=("parallel",)),
    )(idx, packed["w_emb"], packed["w_cnn"], packed["b_cnn"],
      packed["w_gi"], packed["b_gi"], packed["w_hh"], packed["w_lin"],
      packed["vecs"], packed["alphas"])

    return out[:N].reshape(episodes, steps, C)


# ----------------------------------- main ------------------------------------
if __name__ == "__main__":
    key = jax.random.PRNGKey(0)
    k_param, k_data = jax.random.split(key)

    raw_params = make_params(k_param, ARGS)
    packed = pack_params(raw_params, ARGS)

    episodes, steps, comm_len = 2, 4, 6          # comm_len < max_comm_len -> padding
    comm = jax.random.normal(
        k_data, (episodes, steps, comm_len, ARGS.comm_shape), jnp.float32)

    out = comm_in_forward(comm, packed, ARGS)
    out = jax.block_until_ready(out)

    assert out.shape == (episodes, steps, ARGS.encode_comm_size)
    assert bool(jnp.all(jnp.isfinite(out)))
    print("KERNEL_OK")
</pallas_src>

<mosaic_0001>
module attributes {stable_mosaic.version = 11 : i64} {
  func.func @comm_in_kernel(%arg0: i32, %arg1: memref<8x128xi32, #tpu.memory_space<vmem>>, %arg2: memref<128x256xbf16, #tpu.memory_space<vmem>>, %arg3: memref<256x256xbf16, #tpu.memory_space<vmem>>, %arg4: memref<1x256xf32, #tpu.memory_space<vmem>>, %arg5: memref<256x1024xbf16, #tpu.memory_space<vmem>>, %arg6: memref<1x1024xf32, #tpu.memory_space<vmem>>, %arg7: memref<32x128xbf16, #tpu.memory_space<vmem>>, %arg8: memref<32x16xbf16, #tpu.memory_space<vmem>>, %arg9: memref<8x128xf32, #tpu.memory_space<vmem>>, %arg10: memref<4xf32, #tpu.memory_space<smem>>, %arg11: memref<8x16xf32, #tpu.memory_space<vmem>>) attributes {dimension_semantics = [#tpu.dimension_semantics<parallel>], iteration_bounds = array<i64: 1>, scalar_prefetch = 0 : i64, scratch_operands = 0 : i64, tpu.core_type = #tpu.core_type<tc>, window_params = [{transform_indices = @transform_0, window_bounds = array<i64: 8, 128>}, {pipeline_mode = #tpu.pipeline_mode<synchronous>, transform_indices = @transform_1, window_bounds = array<i64: 128, 256>}, {pipeline_mode = #tpu.pipeline_mode<synchronous>, transform_indices = @transform_2, window_bounds = array<i64: 256, 256>}, {pipeline_mode = #tpu.pipeline_mode<synchronous>, transform_indices = @transform_3, window_bounds = array<i64: 1, 256>}, {pipeline_mode = #tpu.pipeline_mode<synchronous>, transform_indices = @transform_4, window_bounds = array<i64: 256, 1024>}, {pipeline_mode = #tpu.pipeline_mode<synchronous>, transform_indices = @transform_5, window_bounds = array<i64: 1, 1024>}, {pipeline_mode = #tpu.pipeline_mode<synchronous>, transform_indices = @transform_6, window_bounds = array<i64: 32, 128>}, {pipeline_mode = #tpu.pipeline_mode<synchronous>, transform_indices = @transform_7, window_bounds = array<i64: 32, 16>}, {pipeline_mode = #tpu.pipeline_mode<synchronous>, transform_indices = @transform_8, window_bounds = array<i64: 8, 128>}, {transform_indices = @transform_9, window_bounds = array<i64: 4>}, {transform_indices = @transform_10, window_bounds = array<i64: 8, 16>}]} {
    %c0 = arith.constant 0 : index
    %0 = memref.load %arg10[%c0] : memref<4xf32, #tpu.memory_space<smem>>
    %c1 = arith.constant 1 : index
    %1 = memref.load %arg10[%c1] : memref<4xf32, #tpu.memory_space<smem>>
    %c2 = arith.constant 2 : index
    %2 = memref.load %arg10[%c2] : memref<4xf32, #tpu.memory_space<smem>>
    %c3 = arith.constant 3 : index
    %3 = memref.load %arg10[%c3] : memref<4xf32, #tpu.memory_space<smem>>
    %4 = tpu.iota {dimensions = array<i32: 1>} : vector<8x128xi32>
    %c0_0 = arith.constant 0 : index
    %c0_1 = arith.constant 0 : index
    %5 = vector.load %arg1[%c0_0, %c0_1] : memref<8x128xi32, #tpu.memory_space<vmem>>, vector<8x128xi32>
    %6 = arith.cmpi eq, %5, %4 : vector<8x128xi32>
    %7 = arith.extui %6 : vector<8x128xi1> to vector<8x128xi32>
    %8 = arith.sitofp %7 : vector<8x128xi32> to vector<8x128xf32>
    %9 = arith.truncf %8 : vector<8x128xf32> to vector<8x128xbf16>
    %c0_2 = arith.constant 0 : index
    %c0_3 = arith.constant 0 : index
    %10 = vector.load %arg2[%c0_2, %c0_3] : memref<128x256xbf16, #tpu.memory_space<vmem>>, vector<128x256xbf16>
    %cst = arith.constant dense<0.000000e+00> : vector<8x256xf32>
    %11 = tpu.matmul %9, %10, %cst {dimension_numbers = #tpu.dot_dimension_numbers<[1], [0], [0], [1], [0, 0, 1, 1], [], []>} : vector<8x128xbf16>, vector<128x256xbf16>, vector<8x256xf32> -> vector<8x256xf32>
    %cst_4 = arith.constant 0.000000e+00 : f32
    %12 = vector.broadcast %cst_4 : f32 to vector<8x256xf32>
    %13 = arith.cmpf oge, %11, %12 : vector<8x256xf32>
    %14 = vector.broadcast %0 : f32 to vector<8x256xf32>
    %15 = arith.mulf %11, %14 : vector<8x256xf32>
    %16 = arith.select %13, %11, %15 : vector<8x256xi1>, vector<8x256xf32>
    %17 = arith.truncf %16 : vector<8x256xf32> to vector<8x256xbf16>
    %c0_5 = arith.constant 0 : index
    %c0_6 = arith.constant 0 : index
    %18 = vector.load %arg3[%c0_5, %c0_6] : memref<256x256xbf16, #tpu.memory_space<vmem>>, vector<256x256xbf16>
    %cst_7 = arith.constant dense<0.000000e+00> : vector<8x256xf32>
    %19 = tpu.matmul %17, %18, %cst_7 {dimension_numbers = #tpu.dot_dimension_numbers<[1], [0], [0], [1], [0, 0, 1, 1], [], []>} : vector<8x256xbf16>, vector<256x256xbf16>, vector<8x256xf32> -> vector<8x256xf32>
    %c0_8 = arith.constant 0 : index
    %c0_9 = arith.constant 0 : index
    %20 = vector.load %arg4[%c0_8, %c0_9] : memref<1x256xf32, #tpu.memory_space<vmem>>, vector<1x256xf32>
    %21 = vector.broadcast %20 : vector<1x256xf32> to vector<8x256xf32>
    %22 = arith.addf %19, %21 : vector<8x256xf32>
    %cst_10 = arith.constant 0.000000e+00 : f32
    %23 = vector.broadcast %cst_10 : f32 to vector<8x256xf32>
    %24 = arith.cmpf oge, %22, %23 : vector<8x256xf32>
    %25 = vector.broadcast %1 : f32 to vector<8x256xf32>
    %26 = arith.mulf %22, %25 : vector<8x256xf32>
    %27 = arith.select %24, %22, %26 : vector<8x256xi1>, vector<8x256xf32>
    %28 = arith.truncf %27 : vector<8x256xf32> to vector<8x256xbf16>
    %c0_11 = arith.constant 0 : index
    %c0_12 = arith.constant 0 : index
    %29 = vector.load %arg5[%c0_11, %c0_12] : memref<256x1024xbf16, #tpu.memory_space<vmem>>, vector<256x1024xbf16>
    %cst_13 = arith.constant dense<0.000000e+00> : vector<8x1024xf32>
    %30 = tpu.matmul %28, %29, %cst_13 {dimension_numbers = #tpu.dot_dimension_numbers<[1], [0], [0], [1], [0, 0, 1, 1], [], []>} : vector<8x256xbf16>, vector<256x1024xbf16>, vector<8x1024xf32> -> vector<8x1024xf32>
    %c0_14 = arith.constant 0 : index
    %c0_15 = arith.constant 0 : index
    %31 = vector.load %arg6[%c0_14, %c0_15] : memref<1x1024xf32, #tpu.memory_space<vmem>>, vector<1x1024xf32>
    %32 = vector.broadcast %31 : vector<1x1024xf32> to vector<8x1024xf32>
    %33 = arith.addf %30, %32 : vector<8x1024xf32>
    %c0_16 = arith.constant 0 : index
    %c0_17 = arith.constant 0 : index
    %34 = vector.load %arg9[%c0_16, %c0_17] : memref<8x128xf32, #tpu.memory_space<vmem>>, vector<1x128xf32>
    %c0_18 = arith.constant 0 : index
    %c0_19 = arith.constant 0 : index
    %35 = vector.load %arg7[%c0_18, %c0_19] : memref<32x128xbf16, #tpu.memory_space<vmem>>, vector<32x128xbf16>
    %cst_20 = arith.constant 0.000000e+00 : f32
    %36 = vector.broadcast %cst_20 : f32 to vector<8x32xf32>
    %37 = vector.extract_strided_slice %33 {offsets = [0, 0], sizes = [8, 128], strides = [1, 1]} : vector<8x1024xf32> to vector<8x128xf32>
    %38 = arith.truncf %36 : vector<8x32xf32> to vector<8x32xbf16>
    %cst_21 = arith.constant dense<0.000000e+00> : vector<8x128xf32>
    %39 = tpu.matmul %38, %35, %cst_21 {dimension_numbers = #tpu.dot_dimension_numbers<[1], [0], [0], [1], [0, 0, 1, 1], [], []>} : vector<8x32xbf16>, vector<32x128xbf16>, vector<8x128xf32> -> vector<8x128xf32>
    %40 = vector.broadcast %34 : vector<1x128xf32> to vector<8x128xf32>
    %41 = arith.addf %39, %40 : vector<8x128xf32>
    %42 = vector.extract_strided_slice %37 {offsets = [0, 0], sizes = [8, 64], strides = [1, 1]} : vector<8x128xf32> to vector<8x64xf32>
    %43 = vector.extract_strided_slice %41 {offsets = [0, 0], sizes = [8, 64], strides = [1, 1]} : vector<8x128xf32> to vector<8x64xf32>
    %44 = arith.addf %42, %43 : vector<8x64xf32>
    %45 = arith.negf %44 : vector<8x64xf32>
    %46 = math.exp %45 : vector<8x64xf32>
    %cst_22 = arith.constant 1.000000e+00 : f32
    %47 = vector.broadcast %cst_22 : f32 to vector<8x64xf32>
    %48 = arith.addf %47, %46 : vector<8x64xf32>
    %49 = arith.divf %47, %48 : vector<8x64xf32>
    %50 = vector.extract_strided_slice %49 {offsets = [0, 0], sizes = [8, 32], strides = [1, 1]} : vector<8x64xf32> to vector<8x32xf32>
    %51 = vector.extract_strided_slice %49 {offsets = [0, 32], sizes = [8, 32], strides = [1, 1]} : vector<8x64xf32> to vector<8x32xf32>
    %52 = vector.extract_strided_slice %37 {offsets = [0, 64], sizes = [8, 32], strides = [1, 1]} : vector<8x128xf32> to vector<8x32xf32>
    %53 = vector.extract_strided_slice %41 {offsets = [0, 64], sizes = [8, 32], strides = [1, 1]} : vector<8x128xf32> to vector<8x32xf32>
    %54 = arith.mulf %50, %53 : vector<8x32xf32>
    %55 = arith.addf %52, %54 : vector<8x32xf32>
    %56 = math.tanh %55 : vector<8x32xf32>
    %cst_23 = arith.constant 1.000000e+00 : f32
    %57 = vector.broadcast %cst_23 : f32 to vector<8x32xf32>
    %58 = arith.subf %57, %51 : vector<8x32xf32>
    %59 = arith.mulf %58, %56 : vector<8x32xf32>
    %60 = arith.mulf %51, %36 : vector<8x32xf32>
    %61 = arith.addf %59, %60 : vector<8x32xf32>
    %62 = vector.extract_strided_slice %33 {offsets = [0, 128], sizes = [8, 128], strides = [1, 1]} : vector<8x1024xf32> to vector<8x128xf32>
    %63 = arith.truncf %61 : vector<8x32xf32> to vector<8x32xbf16>
    %cst_24 = arith.constant dense<0.000000e+00> : vector<8x128xf32>
    %64 = tpu.matmul %63, %35, %cst_24 {dimension_numbers = #tpu.dot_dimension_numbers<[1], [0], [0], [1], [0, 0, 1, 1], [], []>} : vector<8x32xbf16>, vector<32x128xbf16>, vector<8x128xf32> -> vector<8x128xf32>
    %65 = vector.broadcast %34 : vector<1x128xf32> to vector<8x128xf32>
    %66 = arith.addf %64, %65 : vector<8x128xf32>
    %67 = vector.extract_strided_slice %62 {offsets = [0, 0], sizes = [8, 64], strides = [1, 1]} : vector<8x128xf32> to vector<8x64xf32>
    %68 = vector.extract_strided_slice %66 {offsets = [0, 0], sizes = [8, 64], strides = [1, 1]} : vector<8x128xf32> to vector<8x64xf32>
    %69 = arith.addf %67, %68 : vector<8x64xf32>
    %70 = arith.negf %69 : vector<8x64xf32>
    %71 = math.exp %70 : vector<8x64xf32>
    %cst_25 = arith.constant 1.000000e+00 : f32
    %72 = vector.broadcast %cst_25 : f32 to vector<8x64xf32>
    %73 = arith.addf %72, %71 : vector<8x64xf32>
    %74 = arith.divf %72, %73 : vector<8x64xf32>
    %75 = vector.extract_strided_slice %74 {offsets = [0, 0], sizes = [8, 32], strides = [1, 1]} : vector<8x64xf32> to vector<8x32xf32>
    %76 = vector.extract_strided_slice %74 {offsets = [0, 32], sizes = [8, 32], strides = [1, 1]} : vector<8x64xf32> to vector<8x32xf32>
    %77 = vector.extract_strided_slice %62 {offsets = [0, 64], sizes = [8, 32], strides = [1, 1]} : vector<8x128xf32> to vector<8x32xf32>
    %78 = vector.extract_strided_slice %66 {offsets = [0, 64], sizes = [8, 32], strides = [1, 1]} : vector<8x128xf32> to vector<8x32xf32>
    %79 = arith.mulf %75, %78 : vector<8x32xf32>
    %80 = arith.addf %77, %79 : vector<8x32xf32>
    %81 = math.tanh %80 : vector<8x32xf32>
    %cst_26 = arith.constant 1.000000e+00 : f32
    %82 = vector.broadcast %cst_26 : f32 to vector<8x32xf32>
    %83 = arith.subf %82, %76 : vector<8x32xf32>
    %84 = arith.mulf %83, %81 : vector<8x32xf32>
    %85 = arith.mulf %76, %61 : vector<8x32xf32>
    %86 = arith.addf %84, %85 : vector<8x32xf32>
    %87 = vector.extract_strided_slice %33 {offsets = [0, 256], sizes = [8, 128], strides = [1, 1]} : vector<8x1024xf32> to vector<8x128xf32>
    %88 = arith.truncf %86 : vector<8x32xf32> to vector<8x32xbf16>
    %cst_27 = arith.constant dense<0.000000e+00> : vector<8x128xf32>
    %89 = tpu.matmul %88, %35, %cst_27 {dimension_numbers = #tpu.dot_dimension_numbers<[1], [0], [0], [1], [0, 0, 1, 1], [], []>} : vector<8x32xbf16>, vector<32x128xbf16>, vector<8x128xf32> -> vector<8x128xf32>
    %90 = vector.broadcast %34 : vector<1x128xf32> to vector<8x128xf32>
    %91 = arith.addf %89, %90 : vector<8x128xf32>
    %92 = vector.extract_strided_slice %87 {offsets = [0, 0], sizes = [8, 64], strides = [1, 1]} : vector<8x128xf32> to vector<8x64xf32>
    %93 = vector.extract_strided_slice %91 {offsets = [0, 0], sizes = [8, 64], strides = [1, 1]} : vector<8x128xf32> to vector<8x64xf32>
    %94 = arith.addf %92, %93 : vector<8x64xf32>
    %95 = arith.negf %94 : vector<8x64xf32>
    %96 = math.exp %95 : vector<8x64xf32>
    %cst_28 = arith.constant 1.000000e+00 : f32
    %97 = vector.broadcast %cst_28 : f32 to vector<8x64xf32>
    %98 = arith.addf %97, %96 : vector<8x64xf32>
    %99 = arith.divf %97, %98 : vector<8x64xf32>
    %100 = vector.extract_strided_slice %99 {offsets = [0, 0], sizes = [8, 32], strides = [1, 1]} : vector<8x64xf32> to vector<8x32xf32>
    %101 = vector.extract_strided_slice %99 {offsets = [0, 32], sizes = [8, 32], strides = [1, 1]} : vector<8x64xf32> to vector<8x32xf32>
    %102 = vector.extract_strided_slice %87 {offsets = [0, 64], sizes = [8, 32], strides = [1, 1]} : vector<8x128xf32> to vector<8x32xf32>
    %103 = vector.extract_strided_slice %91 {offsets = [0, 64], sizes = [8, 32], strides = [1, 1]} : vector<8x128xf32> to vector<8x32xf32>
    %104 = arith.mulf %100, %103 : vector<8x32xf32>
    %105 = arith.addf %102, %104 : vector<8x32xf32>
    %106 = math.tanh %105 : vector<8x32xf32>
    %cst_29 = arith.constant 1.000000e+00 : f32
    %107 = vector.broadcast %cst_29 : f32 to vector<8x32xf32>
    %108 = arith.subf %107, %101 : vector<8x32xf32>
    %109 = arith.mulf %108, %106 : vector<8x32xf32>
    %110 = arith.mulf %101, %86 : vector<8x32xf32>
    %111 = arith.addf %109, %110 : vector<8x32xf32>
    %112 = vector.extract_strided_slice %33 {offsets = [0, 384], sizes = [8, 128], strides = [1, 1]} : vector<8x1024xf32> to vector<8x128xf32>
    %113 = arith.truncf %111 : vector<8x32xf32> to vector<8x32xbf16>
    %cst_30 = arith.constant dense<0.000000e+00> : vector<8x128xf32>
    %114 = tpu.matmul %113, %35, %cst_30 {dimension_numbers = #tpu.dot_dimension_numbers<[1], [0], [0], [1], [0, 0, 1, 1], [], []>} : vector<8x32xbf16>, vector<32x128xbf16>, vector<8x128xf32> -> vector<8x128xf32>
    %115 = vector.broadcast %34 : vector<1x128xf32> to vector<8x128xf32>
    %116 = arith.addf %114, %115 : vector<8x128xf32>
    %117 = vector.extract_strided_slice %112 {offsets = [0, 0], sizes = [8, 64], strides = [1, 1]} : vector<8x128xf32> to vector<8x64xf32>
    %118 = vector.extract_strided_slice %116 {offsets = [0, 0], sizes = [8, 64], strides = [1, 1]} : vector<8x128xf32> to vector<8x64xf32>
    %119 = arith.addf %117, %118 : vector<8x64xf32>
    %120 = arith.negf %119 : vector<8x64xf32>
    %121 = math.exp %120 : vector<8x64xf32>
    %cst_31 = arith.constant 1.000000e+00 : f32
    %122 = vector.broadcast %cst_31 : f32 to vector<8x64xf32>
    %123 = arith.addf %122, %121 : vector<8x64xf32>
    %124 = arith.divf %122, %123 : vector<8x64xf32>
    %125 = vector.extract_strided_slice %124 {offsets = [0, 0], sizes = [8, 32], strides = [1, 1]} : vector<8x64xf32> to vector<8x32xf32>
    %126 = vector.extract_strided_slice %124 {offsets = [0, 32], sizes = [8, 32], strides = [1, 1]} : vector<8x64xf32> to vector<8x32xf32>
    %127 = vector.extract_strided_slice %112 {offsets = [0, 64], sizes = [8, 32], strides = [1, 1]} : vector<8x128xf32> to vector<8x32xf32>
    %128 = vector.extract_strided_slice %116 {offsets = [0, 64], sizes = [8, 32], strides = [1, 1]} : vector<8x128xf32> to vector<8x32xf32>
    %129 = arith.mulf %125, %128 : vector<8x32xf32>
    %130 = arith.addf %127, %129 : vector<8x32xf32>
    %131 = math.tanh %130 : vector<8x32xf32>
    %cst_32 = arith.constant 1.000000e+00 : f32
    %132 = vector.broadcast %cst_32 : f32 to vector<8x32xf32>
    %133 = arith.subf %132, %126 : vector<8x32xf32>
    %134 = arith.mulf %133, %131 : vector<8x32xf32>
    %135 = arith.mulf %126, %111 : vector<8x32xf32>
    %136 = arith.addf %134, %135 : vector<8x32xf32>
    %137 = vector.extract_strided_slice %33 {offsets = [0, 512], sizes = [8, 128], strides = [1, 1]} : vector<8x1024xf32> to vector<8x128xf32>
    %138 = arith.truncf %136 : vector<8x32xf32> to vector<8x32xbf16>
    %cst_33 = arith.constant dense<0.000000e+00> : vector<8x128xf32>
    %139 = tpu.matmul %138, %35, %cst_33 {dimension_numbers = #tpu.dot_dimension_numbers<[1], [0], [0], [1], [0, 0, 1, 1], [], []>} : vector<8x32xbf16>, vector<32x128xbf16>, vector<8x128xf32> -> vector<8x128xf32>
    %140 = vector.broadcast %34 : vector<1x128xf32> to vector<8x128xf32>
    %141 = arith.addf %139, %140 : vector<8x128xf32>
    %142 = vector.extract_strided_slice %137 {offsets = [0, 0], sizes = [8, 64], strides = [1, 1]} : vector<8x128xf32> to vector<8x64xf32>
    %143 = vector.extract_strided_slice %141 {offsets = [0, 0], sizes = [8, 64], strides = [1, 1]} : vector<8x128xf32> to vector<8x64xf32>
    %144 = arith.addf %142, %143 : vector<8x64xf32>
    %145 = arith.negf %144 : vector<8x64xf32>
    %146 = math.exp %145 : vector<8x64xf32>
    %cst_34 = arith.constant 1.000000e+00 : f32
    %147 = vector.broadcast %cst_34 : f32 to vector<8x64xf32>
    %148 = arith.addf %147, %146 : vector<8x64xf32>
    %149 = arith.divf %147, %148 : vector<8x64xf32>
    %150 = vector.extract_strided_slice %149 {offsets = [0, 0], sizes = [8, 32], strides = [1, 1]} : vector<8x64xf32> to vector<8x32xf32>
    %151 = vector.extract_strided_slice %149 {offsets = [0, 32], sizes = [8, 32], strides = [1, 1]} : vector<8x64xf32> to vector<8x32xf32>
    %152 = vector.extract_strided_slice %137 {offsets = [0, 64], sizes = [8, 32], strides = [1, 1]} : vector<8x128xf32> to vector<8x32xf32>
    %153 = vector.extract_strided_slice %141 {offsets = [0, 64], sizes = [8, 32], strides = [1, 1]} : vector<8x128xf32> to vector<8x32xf32>
    %154 = arith.mulf %150, %153 : vector<8x32xf32>
    %155 = arith.addf %152, %154 : vector<8x32xf32>
    %156 = math.tanh %155 : vector<8x32xf32>
    %cst_35 = arith.constant 1.000000e+00 : f32
    %157 = vector.broadcast %cst_35 : f32 to vector<8x32xf32>
    %158 = arith.subf %157, %151 : vector<8x32xf32>
    %159 = arith.mulf %158, %156 : vector<8x32xf32>
    %160 = arith.mulf %151, %136 : vector<8x32xf32>
    %161 = arith.addf %159, %160 : vector<8x32xf32>
    %162 = vector.extract_strided_slice %33 {offsets = [0, 640], sizes = [8, 128], strides = [1, 1]} : vector<8x1024xf32> to vector<8x128xf32>
    %163 = arith.truncf %161 : vector<8x32xf32> to vector<8x32xbf16>
    %cst_36 = arith.constant dense<0.000000e+00> : vector<8x128xf32>
    %164 = tpu.matmul %163, %35, %cst_36 {dimension_numbers = #tpu.dot_dimension_numbers<[1], [0], [0], [1], [0, 0, 1, 1], [], []>} : vector<8x32xbf16>, vector<32x128xbf16>, vector<8x128xf32> -> vector<8x128xf32>
    %165 = vector.broadcast %34 : vector<1x128xf32> to vector<8x128xf32>
    %166 = arith.addf %164, %165 : vector<8x128xf32>
    %167 = vector.extract_strided_slice %162 {offsets = [0, 0], sizes = [8, 64], strides = [1, 1]} : vector<8x128xf32> to vector<8x64xf32>
    %168 = vector.extract_strided_slice %166 {offsets = [0, 0], sizes = [8, 64], strides = [1, 1]} : vector<8x128xf32> to vector<8x64xf32>
    %169 = arith.addf %167, %168 : vector<8x64xf32>
    %170 = arith.negf %169 : vector<8x64xf32>
    %171 = math.exp %170 : vector<8x64xf32>
    %cst_37 = arith.constant 1.000000e+00 : f32
    %172 = vector.broadcast %cst_37 : f32 to vector<8x64xf32>
    %173 = arith.addf %172, %171 : vector<8x64xf32>
    %174 = arith.divf %172, %173 : vector<8x64xf32>
    %175 = vector.extract_strided_slice %174 {offsets = [0, 0], sizes = [8, 32], strides = [1, 1]} : vector<8x64xf32> to vector<8x32xf32>
    %176 = vector.extract_strided_slice %174 {offsets = [0, 32], sizes = [8, 32], strides = [1, 1]} : vector<8x64xf32> to vector<8x32xf32>
    %177 = vector.extract_strided_slice %162 {offsets = [0, 64], sizes = [8, 32], strides = [1, 1]} : vector<8x128xf32> to vector<8x32xf32>
    %178 = vector.extract_strided_slice %166 {offsets = [0, 64], sizes = [8, 32], strides = [1, 1]} : vector<8x128xf32> to vector<8x32xf32>
    %179 = arith.mulf %175, %178 : vector<8x32xf32>
    %180 = arith.addf %177, %179 : vector<8x32xf32>
    %181 = math.tanh %180 : vector<8x32xf32>
    %cst_38 = arith.constant 1.000000e+00 : f32
    %182 = vector.broadcast %cst_38 : f32 to vector<8x32xf32>
    %183 = arith.subf %182, %176 : vector<8x32xf32>
    %184 = arith.mulf %183, %181 : vector<8x32xf32>
    %185 = arith.mulf %176, %161 : vector<8x32xf32>
    %186 = arith.addf %184, %185 : vector<8x32xf32>
    %187 = vector.extract_strided_slice %33 {offsets = [0, 768], sizes = [8, 128], strides = [1, 1]} : vector<8x1024xf32> to vector<8x128xf32>
    %188 = arith.truncf %186 : vector<8x32xf32> to vector<8x32xbf16>
    %cst_39 = arith.constant dense<0.000000e+00> : vector<8x128xf32>
    %189 = tpu.matmul %188, %35, %cst_39 {dimension_numbers = #tpu.dot_dimension_numbers<[1], [0], [0], [1], [0, 0, 1, 1], [], []>} : vector<8x32xbf16>, vector<32x128xbf16>, vector<8x128xf32> -> vector<8x128xf32>
    %190 = vector.broadcast %34 : vector<1x128xf32> to vector<8x128xf32>
    %191 = arith.addf %189, %190 : vector<8x128xf32>
    %192 = vector.extract_strided_slice %187 {offsets = [0, 0], sizes = [8, 64], strides = [1, 1]} : vector<8x128xf32> to vector<8x64xf32>
    %193 = vector.extract_strided_slice %191 {offsets = [0, 0], sizes = [8, 64], strides = [1, 1]} : vector<8x128xf32> to vector<8x64xf32>
    %194 = arith.addf %192, %193 : vector<8x64xf32>
    %195 = arith.negf %194 : vector<8x64xf32>
    %196 = math.exp %195 : vector<8x64xf32>
    %cst_40 = arith.constant 1.000000e+00 : f32
    %197 = vector.broadcast %cst_40 : f32 to vector<8x64xf32>
    %198 = arith.addf %197, %196 : vector<8x64xf32>
    %199 = arith.divf %197, %198 : vector<8x64xf32>
    %200 = vector.extract_strided_slice %199 {offsets = [0, 0], sizes = [8, 32], strides = [1, 1]} : vector<8x64xf32> to vector<8x32xf32>
    %201 = vector.extract_strided_slice %199 {offsets = [0, 32], sizes = [8, 32], strides = [1, 1]} : vector<8x64xf32> to vector<8x32xf32>
    %202 = vector.extract_strided_slice %187 {offsets = [0, 64], sizes = [8, 32], strides = [1, 1]} : vector<8x128xf32> to vector<8x32xf32>
    %203 = vector.extract_strided_slice %191 {offsets = [0, 64], sizes = [8, 32], strides = [1, 1]} : vector<8x128xf32> to vector<8x32xf32>
    %204 = arith.mulf %200, %203 : vector<8x32xf32>
    %205 = arith.addf %202, %204 : vector<8x32xf32>
    %206 = math.tanh %205 : vector<8x32xf32>
    %cst_41 = arith.constant 1.000000e+00 : f32
    %207 = vector.broadcast %cst_41 : f32 to vector<8x32xf32>
    %208 = arith.subf %207, %201 : vector<8x32xf32>
    %209 = arith.mulf %208, %206 : vector<8x32xf32>
    %210 = arith.mulf %201, %186 : vector<8x32xf32>
    %211 = arith.addf %209, %210 : vector<8x32xf32>
    %212 = vector.extract_strided_slice %33 {offsets = [0, 896], sizes = [8, 128], strides = [1, 1]} : vector<8x1024xf32> to vector<8x128xf32>
    %213 = arith.truncf %211 : vector<8x32xf32> to vector<8x32xbf16>
    %cst_42 = arith.constant dense<0.000000e+00> : vector<8x128xf32>
    %214 = tpu.matmul %213, %35, %cst_42 {dimension_numbers = #tpu.dot_dimension_numbers<[1], [0], [0], [1], [0, 0, 1, 1], [], []>} : vector<8x32xbf16>, vector<32x128xbf16>, vector<8x128xf32> -> vector<8x128xf32>
    %215 = vector.broadcast %34 : vector<1x128xf32> to vector<8x128xf32>
    %216 = arith.addf %214, %215 : vector<8x128xf32>
    %217 = vector.extract_strided_slice %212 {offsets = [0, 0], sizes = [8, 64], strides = [1, 1]} : vector<8x128xf32> to vector<8x64xf32>
    %218 = vector.extract_strided_slice %216 {offsets = [0, 0], sizes = [8, 64], strides = [1, 1]} : vector<8x128xf32> to vector<8x64xf32>
    %219 = arith.addf %217, %218 : vector<8x64xf32>
    %220 = arith.negf %219 : vector<8x64xf32>
    %221 = math.exp %220 : vector<8x64xf32>
    %cst_43 = arith.constant 1.000000e+00 : f32
    %222 = vector.broadcast %cst_43 : f32 to vector<8x64xf32>
    %223 = arith.addf %222, %221 : vector<8x64xf32>
    %224 = arith.divf %222, %223 : vector<8x64xf32>
    %225 = vector.extract_strided_slice %224 {offsets = [0, 0], sizes = [8, 32], strides = [1, 1]} : vector<8x64xf32> to vector<8x32xf32>
    %226 = vector.extract_strided_slice %224 {offsets = [0, 32], sizes = [8, 32], strides = [1, 1]} : vector<8x64xf32> to vector<8x32xf32>
    %227 = vector.extract_strided_slice %212 {offsets = [0, 64], sizes = [8, 32], strides = [1, 1]} : vector<8x128xf32> to vector<8x32xf32>
    %228 = vector.extract_strided_slice %216 {offsets = [0, 64], sizes = [8, 32], strides = [1, 1]} : vector<8x128xf32> to vector<8x32xf32>
    %229 = arith.mulf %225, %228 : vector<8x32xf32>
    %230 = arith.addf %227, %229 : vector<8x32xf32>
    %231 = math.tanh %230 : vector<8x32xf32>
    %cst_44 = arith.constant 1.000000e+00 : f32
    %232 = vector.broadcast %cst_44 : f32 to vector<8x32xf32>
    %233 = arith.subf %232, %226 : vector<8x32xf32>
    %234 = arith.mulf %233, %231 : vector<8x32xf32>
    %235 = arith.mulf %226, %211 : vector<8x32xf32>
    %236 = arith.addf %234, %235 : vector<8x32xf32>
    %c1_45 = arith.constant 1 : index
    %c0_46 = arith.constant 0 : index
    %237 = vector.load %arg9[%c1_45, %c0_46] : memref<8x128xf32, #tpu.memory_space<vmem>>, vector<1x32xf32>
    %c2_47 = arith.constant 2 : index
    %c0_48 = arith.constant 0 : index
    %238 = vector.load %arg9[%c2_47, %c0_48] : memref<8x128xf32, #tpu.memory_space<vmem>>, vector<1x32xf32>
    %c3_49 = arith.constant 3 : index
    %c0_50 = arith.constant 0 : index
    %239 = vector.load %arg9[%c3_49, %c0_50] : memref<8x128xf32, #tpu.memory_space<vmem>>, vector<1x16xf32>
    %240 = vector.broadcast %237 : vector<1x32xf32> to vector<8x32xf32>
    %241 = arith.mulf %236, %240 : vector<8x32xf32>
    %242 = vector.broadcast %238 : vector<1x32xf32> to vector<8x32xf32>
    %243 = arith.addf %241, %242 : vector<8x32xf32>
    %cst_51 = arith.constant 0.000000e+00 : f32
    %244 = vector.broadcast %cst_51 : f32 to vector<8x32xf32>
    %245 = arith.cmpf oge, %243, %244 : vector<8x32xf32>
    %246 = vector.broadcast %2 : f32 to vector<8x32xf32>
    %247 = arith.mulf %243, %246 : vector<8x32xf32>
    %248 = arith.select %245, %243, %247 : vector<8x32xi1>, vector<8x32xf32>
    %249 = arith.truncf %248 : vector<8x32xf32> to vector<8x32xbf16>
    %c0_52 = arith.constant 0 : index
    %c0_53 = arith.constant 0 : index
    %250 = vector.load %arg8[%c0_52, %c0_53] : memref<32x16xbf16, #tpu.memory_space<vmem>>, vector<32x16xbf16>
    %cst_54 = arith.constant dense<0.000000e+00> : vector<8x16xf32>
    %251 = tpu.matmul %249, %250, %cst_54 {dimension_numbers = #tpu.dot_dimension_numbers<[1], [0], [0], [1], [0, 0, 1, 1], [], []>} : vector<8x32xbf16>, vector<32x16xbf16>, vector<8x16xf32> -> vector<8x16xf32>
    %252 = vector.broadcast %239 : vector<1x16xf32> to vector<8x16xf32>
    %253 = arith.addf %251, %252 : vector<8x16xf32>
    %cst_55 = arith.constant 0.000000e+00 : f32
    %254 = vector.broadcast %cst_55 : f32 to vector<8x16xf32>
    %255 = arith.cmpf oge, %253, %254 : vector<8x16xf32>
    %256 = vector.broadcast %3 : f32 to vector<8x16xf32>
    %257 = arith.mulf %253, %256 : vector<8x16xf32>
    %258 = arith.select %255, %253, %257 : vector<8x16xi1>, vector<8x16xf32>
    %c0_56 = arith.constant 0 : index
    %c0_57 = arith.constant 0 : index
    %259 = vector.load %arg11[%c0_56, %c0_57] : memref<8x16xf32, #tpu.memory_space<vmem>>, vector<8x16xf32>
    tpu.vector_store %arg11[%c0_56, %c0_57], %258 {strides = array<i32>} : memref<8x16xf32, #tpu.memory_space<vmem>>, vector<8x16xf32>,
    return
  }
  func.func @transform_0(%arg0: i32) -> (i32, i32) {
    %c0_i32 = arith.constant 0 : i32
    %c0_i32_0 = arith.constant 0 : i32
    return %arg0, %c0_i32 : i32, i32
  }
  func.func @transform_1(%arg0: i32) -> (i32, i32) {
    %c0_i32 = arith.constant 0 : i32
    %c0_i32_0 = arith.constant 0 : i32
    %c0_i32_1 = arith.constant 0 : i32
    return %c0_i32, %c0_i32_0 : i32, i32
  }
  func.func @transform_2(%arg0: i32) -> (i32, i32) {
    %c0_i32 = arith.constant 0 : i32
    %c0_i32_0 = arith.constant 0 : i32
    %c0_i32_1 = arith.constant 0 : i32
    return %c0_i32, %c0_i32_0 : i32, i32
  }
  func.func @transform_3(%arg0: i32) -> (i32, i32) {
    %c0_i32 = arith.constant 0 : i32
    %c0_i32_0 = arith.constant 0 : i32
    %c0_i32_1 = arith.constant 0 : i32
    return %c0_i32, %c0_i32_0 : i32, i32
  }
  func.func @transform_4(%arg0: i32) -> (i32, i32) {
    %c0_i32 = arith.constant 0 : i32
    %c0_i32_0 = arith.constant 0 : i32
    %c0_i32_1 = arith.constant 0 : i32
    return %c0_i32, %c0_i32_0 : i32, i32
  }
  func.func @transform_5(%arg0: i32) -> (i32, i32) {
    %c0_i32 = arith.constant 0 : i32
    %c0_i32_0 = arith.constant 0 : i32
    %c0_i32_1 = arith.constant 0 : i32
    return %c0_i32, %c0_i32_0 : i32, i32
  }
  func.func @transform_6(%arg0: i32) -> (i32, i32) {
    %c0_i32 = arith.constant 0 : i32
    %c0_i32_0 = arith.constant 0 : i32
    %c0_i32_1 = arith.constant 0 : i32
    return %c0_i32, %c0_i32_0 : i32, i32
  }
  func.func @transform_7(%arg0: i32) -> (i32, i32) {
    %c0_i32 = arith.constant 0 : i32
    %c0_i32_0 = arith.constant 0 : i32
    %c0_i32_1 = arith.constant 0 : i32
    return %c0_i32, %c0_i32_0 : i32, i32
  }
  func.func @transform_8(%arg0: i32) -> (i32, i32) {
    %c0_i32 = arith.constant 0 : i32
    %c0_i32_0 = arith.constant 0 : i32
    %c0_i32_1 = arith.constant 0 : i32
    return %c0_i32, %c0_i32_0 : i32, i32
  }
  func.func @transform_9(%arg0: i32) -> i32 {
    %c0_i32 = arith.constant 0 : i32
    %c0_i32_0 = arith.constant 0 : i32
    return %c0_i32 : i32
  }
  func.func @transform_10(%arg0: i32) -> (i32, i32) {
    %c0_i32 = arith.constant 0 : i32
    %c0_i32_0 = arith.constant 0 : i32
    return %arg0, %c0_i32 : i32, i32
  }
}

</mosaic_0001>

<bundles_post_ra>
// kernel: comm_in_forward.1
= control target key start
LH: loop header
LB: loop body
LE: loop exit
PB: predicated region body
PF: predicated region fallthrough
CT: control target
= control target key end

     0   :  { %15 = vsyncpa [#allocation3], 0  ;;  %s3125_s0 = inlined_call_operand.vmem [shape: s32[8,128], index: 0, kind: input, shape index: {}]   ;;  %s3126_s1 = inlined_call_operand.hbm [shape: bf16[128,256], index: 1, kind: input, shape index: {}]   ;;  %s3127_s2 = inlined_call_operand.vmem [shape: bf16[256,256], index: 2, kind: input, shape index: {}]   ;;  %s3128_s3 = inlined_call_operand.vmem [shape: f32[1,256], index: 3, kind: input, shape index: {}]   ;;  %s3129_s4 = inlined_call_operand.hbm [shape: bf16[256,1024], index: 4, kind: input, shape index: {}]   ;;  %s3130_s5 = inlined_call_operand.vmem [shape: f32[1,1024], index: 5, kind: input, shape index: {}]   ;;  %s3131_s6 = inlined_call_operand.vmem [shape: bf16[32,128], index: 6, kind: input, shape index: {}]   ;;  %s3132_s7 = inlined_call_operand.vmem [shape: bf16[32,16], index: 7, kind: input, shape index: {}]   ;;  %s3133_s8 = inlined_call_operand.vmem [shape: f32[8,128], index: 8, kind: input, shape index: {}]   ;;  %s3134_s9 = inlined_call_operand.vmem [shape: f32[4], index: 9, kind: input, shape index: {}]   ;;  %s3135_s10 = inlined_call_operand.hbm [shape: f32[8,16], index: 10, kind: output, shape index: {}]  }
   0x1   :  { %16 = vsyncpa [#allocation7], 0 }
   0x2   :  { %17 = vsyncpa [#allocation5], 0 }
   0x3   :  { %18 = vsyncpa [#allocation4], 0  ;;  %s2709_s13 = smov [#allocation2]   ;;  %s2623_s17 = scalar_lea.hbm %s3126_s1, 2048 }
   0x4   :  { %s26_s14 = sshll.u32 %s2709_s13, 4  ;;  %p2624_p0 = scmp.ne.s32.totalorder %s3126_s1, %s2623_s17  ;;  %s27_s14 = int_to_ptr.vmem [resolvable:$true] %s26_s14 }
   0x5   :  { %p2627_p1 = scmp.lt.u32.totalorder %s2623_s17, %s3126_s1 }
   0x7   :  { %p2629_p2 = pnand %p2627_p1, %p2624_p0 }
   0x9   :  { %2632 = shalt.err (!%p2629_p2)
}
   0xa   :  { %s2633_s22 = scalar_lea.vmem %s27_s14, 2048  ;;  %p2638_p4 = scmp.lt.s32.totalorder %s27_s14, %s27_s14 }
   0xb   :  { %p2634_p3 = scmp.ne.s32.totalorder %s27_s14, %s2633_s22  ;;  %p2639_p5 = scmp.lt.s32.totalorder %s2633_s22, %s2633_s22 }
   0xd   :  { %p2640_p6 = por %p2639_p5, %p2638_p4 }
   0xf   :  { %p2641_p7 = pnand %p2640_p6, %p2634_p3 }
  0x11   :  { %2644 = shalt.err (!%p2641_p7)
}
  0x12   :  { %s2710_s23 = smov 128   ;;  %s2711_s24 = smov 8  }
  0x13   :  { %32 = dma.hbm_to_vmem [thread:$0]  %s3126_s1, 2048, %s27_s14, [#allocation3], %s2710_s23, %s2710_s23, %s2711_s24  }
  0x14   :  { %s2712_s27 = smov [#allocation6]   ;;  %s2645_s11 = scalar_lea.hbm %s3129_s4, 16384 }
  0x15   :  { %s42_s28 = sshll.u32 %s2712_s27, 4  ;;  %p2646_p8 = scmp.ne.s32.totalorder %s3129_s4, %s2645_s11  ;;  %s43_s28 = int_to_ptr.vmem [resolvable:$true] %s42_s28 }
  0x16   :  { %p2649_p9 = scmp.lt.u32.totalorder %s2645_s11, %s3129_s4 }
  0x18   :  { %p2651_p10 = pnand %p2649_p9, %p2646_p8 }
  0x1a   :  { %2654 = shalt.err (!%p2651_p10)
}
  0x1b   :  { %s2655_s17 = scalar_lea.vmem %s43_s28, 16384  ;;  %p2660_p12 = scmp.lt.s32.totalorder %s43_s28, %s43_s28 }
  0x1c   :  { %p2656_p11 = scmp.ne.s32.totalorder %s43_s28, %s2655_s17  ;;  %p2661_p13 = scmp.lt.s32.totalorder %s2655_s17, %s2655_s17 }
  0x1e   :  { %p2662_p0 = por %p2661_p13, %p2660_p12 }
  0x20   :  { %p2663_p1 = pnand %p2662_p0, %p2656_p11 }
  0x22   :  { %2666 = shalt.err (!%p2663_p1)
}
  0x23   :  { %s2713_s1 = smov 512   ;;  %s2714_s14 = smov 32  }
  0x24   :  { %48 = dma.hbm_to_vmem [thread:$0]  %s3129_s4, 16384, %s43_s28, [#allocation7], %s2713_s1, %s2713_s1, %s2714_s14  }
  0x25   :  { %s63_s22 = sshll.u32 %s3134_s9, 4  ;;  %s64_s22 = int_to_ptr.vmem [resolvable:$true] %s63_s22 }
  0x26   :  { %s2667_s23 = scalar_lea.vmem %s64_s22, 16  ;;  %p2672_p3 = scmp.lt.s32.totalorder %s64_s22, %s64_s22 }
  0x27   :  { %p2668_p2 = scmp.ne.s32.totalorder %s64_s22, %s2667_s23  ;;  %p2673_p4 = scmp.lt.s32.totalorder %s2667_s23, %s2667_s23 }
  0x29   :  { %p2674_p5 = por %p2673_p4, %p2672_p3 }
  0x2b   :  { %p2675_p6 = pnand %p2674_p5, %p2668_p2 }
  0x2d   :  { %2678 = shalt.err (!%p2675_p6)
}
  0x2e   :  { %s2715_s24 = smov [#allocation8]  }
  0x2f   :  { %66 = dma.vmem_to_smem %s64_s22, 16, %s2715_s24, [#allocation5]  }
  0x30   :  { %2701 = dma.done.wait [#allocation3], 2048  }
  0x31   :  { %2702 = vsyncadd [#allocation3], 4294965248 }
  0x32   :  { %2703 = dma.done.wait [#allocation7], 16384  }
  0x33   :  { %2704 = vsyncadd [#allocation7], 4294950912 }
  0x34   :  { %2705 = dma.done.wait [#allocation5], 16  }
  0x35   :  { %2706 = vsyncadd [#allocation5], 4294967280 }
  0x36   :  { %76 = sfence }
  0x37   :  { %v2499_v0 = vld [vmem:[#allocation2 + $0x4] ss:$8 sps:$4 sm:$0xff]   ;;  %v2501_v1 = vld [vmem:[#allocation2] ss:$8 sps:$4 sm:$0xff]   ;;  %v2716_v2 = vmov 0   ;;  %v82_v18 = vlaneseq  ;;  %s2180_s23 = sld [smem:[#allocation8 + $0x1]] }
  0x38   :  { %217 = vmatprep.mubr.bf16.mxu0 %v2716_v2  ;;  %185 = vmatprep.subr.bf16.mxu0 %v2499_v0  ;;  %v2502_v3 = vld [vmem:[#allocation2 + $0x14] ss:$8 sps:$4 sm:$0xff]   ;;  %v2504_v4 = vld [vmem:[#allocation2 + $0x10] ss:$8 sps:$4 sm:$0xff]   ;;  %v2505_v5 = vld [vmem:[#allocation2 + $0x24] ss:$8 sps:$4 sm:$0xff]  }
  0x39   :  { %186 = vmatpush1.bf16.msra.mxu0 %v2501_v1  ;;  %v2507_v6 = vld [vmem:[#allocation2 + $0x20] ss:$8 sps:$4 sm:$0xff]   ;;  %v2508_v7 = vld [vmem:[#allocation2 + $0x34] ss:$8 sps:$4 sm:$0xff]   ;;  %v2510_v8 = vld [vmem:[#allocation2 + $0x30] ss:$8 sps:$4 sm:$0xff]  }
  0x3a   :  { %187 = vmatprep.subr.bf16.mxu0 %v2502_v3  ;;  %v2523_v9 = vld [vmem:[%s3127_s2 + $0x4] ss:$8 sps:$4 sm:$0xff]   ;;  %v2525_v11 = vld [vmem:[%s3127_s2] ss:$8 sps:$4 sm:$0xff]   ;;  %v2526_v13 = vld [vmem:[%s3127_s2 + $0x14] ss:$8 sps:$4 sm:$0xff]  }
  0x3b   :  { %v2511_v10 = vld [vmem:[#allocation2 + $0x44] ss:$8 sps:$4 sm:$0xff]   ;;  %v2513_v12 = vld [vmem:[#allocation2 + $0x40] ss:$8 sps:$4 sm:$0xff]   ;;  %439 = vmatprep.subr.bf16.mxu1 %v2523_v9  ;;  %v2528_v14 = vld [vmem:[%s3127_s2 + $0x10] ss:$8 sps:$4 sm:$0xff]  }
  0x3c   :  { %440 = vmatpush1.bf16.msra.mxu1 %v2525_v11  ;;  %v2529_v15 = vld [vmem:[%s3127_s2 + $0x24] ss:$8 sps:$4 sm:$0xff]   ;;  %v2514_v16 = vld [vmem:[#allocation2 + $0x54] ss:$8 sps:$4 sm:$0xff]   ;;  %v2516_v17 = vld [vmem:[#allocation2 + $0x50] ss:$8 sps:$4 sm:$0xff]  }
  0x3d   :  { %188 = vmatpush1.bf16.msra.mxu0 %v2504_v4  ;;  %441 = vmatprep.subr.bf16.mxu1 %v2526_v13  ;;  %v2531_v19 = vld [vmem:[%s3127_s2 + $0x20] ss:$8 sps:$4 sm:$0xff]   ;;  %v2532_v20 = vld [vmem:[%s3127_s2 + $0x34] ss:$8 sps:$4 sm:$0xff]   ;;  %v2517_v21 = vld [vmem:[#allocation2 + $0x64] ss:$8 sps:$4 sm:$0xff]  }
  0x3e   :  { %189 = vmatprep.subr.bf16.mxu0 %v2505_v5  ;;  %v2519_v22 = vld [vmem:[#allocation2 + $0x60] ss:$8 sps:$4 sm:$0xff]   ;;  %v83_v23 = vand.u32 127, %v82_v18  ;;  %v2534_v25 = vld [vmem:[%s3127_s2 + $0x30] ss:$8 sps:$4 sm:$0xff]   ;;  %vm2719_vm6 = vmmov 0  }
  0x3f   :  { %v84_v24 = vld [vmem:[%s3125_s0] sm:$0xff]  ;;  %v2520_v27 = vld [vmem:[#allocation2 + $0x74] ss:$8 sps:$4 sm:$0xff]   ;;  %v2522_v28 = vld [vmem:[#allocation2 + $0x70] ss:$8 sps:$4 sm:$0xff]   ;;  %s2720_s27 = smov 64  }
  0x40   :  { %442 = vmatpush1.bf16.msra.mxu1 %v2528_v14  ;;  %v2535_v26 = vld [vmem:[%s3127_s2 + $0x44] ss:$8 sps:$4 sm:$0xff]   ;;  %vm85_vm0 = vcmp.eq.s32.totalorder %v84_v24, %v83_v23  ;;  %v2537_v29 = vld [vmem:[%s3127_s2 + $0x40] ss:$8 sps:$4 sm:$0xff]   ;;  %v2538_v30 = vld [vmem:[%s3127_s2 + $0x54] ss:$8 sps:$4 sm:$0xff]  }
  0x41   :  { %190 = vmatpush1.bf16.msra.mxu0 %v2507_v6  ;;  %443 = vmatprep.subr.bf16.mxu1 %v2529_v15  ;;  %vm2200_vm1 = vmpackc.low %vm85_vm0, %vm85_vm0  ;;  %v2540_v31 = vld [vmem:[%s3127_s2 + $0x50] ss:$8 sps:$4 sm:$0xff]   ;;  %v2541_v32 = vld [vmem:[%s3127_s2 + $0x64] ss:$8 sps:$4 sm:$0xff]   ;;  %v2717_v33 = vmov 1.0|1.0  }
  0x42   :  { %191 = vmatprep.subr.bf16.mxu0 %v2508_v7  ;;  %v2543_v34 = vld [vmem:[%s3127_s2 + $0x60] ss:$8 sps:$4 sm:$0xff]   ;;  %v2544_v35 = vld [vmem:[%s3127_s2 + $0x74] ss:$8 sps:$4 sm:$0xff]   ;;  %v2546_v36 = vld [vmem:[%s3127_s2 + $0x70] ss:$8 sps:$4 sm:$0xff]  }
  0x43   :  { %v2547_v37 = vld [vmem:[%s3127_s2 + $0x84] ss:$8 sps:$4 sm:$0xff]   ;;  %v2549_v38 = vld [vmem:[%s3127_s2 + $0x80] ss:$8 sps:$4 sm:$0xff]   ;;  %v2550_v39 = vld [vmem:[%s3127_s2 + $0x94] ss:$8 sps:$4 sm:$0xff]  }
  0x44   :  { %444 = vmatpush1.bf16.msra.mxu1 %v2531_v19  ;;  %v2552_v40 = vld [vmem:[%s3127_s2 + $0x90] ss:$8 sps:$4 sm:$0xff]   ;;  %v2553_v41 = vld [vmem:[%s3127_s2 + $0xa4] ss:$8 sps:$4 sm:$0xff]   ;;  %v2555_v42 = vld [vmem:[%s3127_s2 + $0xa0] ss:$8 sps:$4 sm:$0xff]  }
  0x45   :  { %192 = vmatpush1.bf16.msra.mxu0 %v2510_v8  ;;  %445 = vmatprep.subr.bf16.mxu1 %v2532_v20  ;;  %v2556_v43 = vld [vmem:[%s3127_s2 + $0xb4] ss:$8 sps:$4 sm:$0xff]   ;;  %v2558_v44 = vld [vmem:[%s3127_s2 + $0xb0] ss:$8 sps:$4 sm:$0xff]   ;;  %v2559_v45 = vld [vmem:[%s3127_s2 + $0xc4] ss:$8 sps:$4 sm:$0xff]  }
  0x46   :  { %193 = vmatprep.subr.bf16.mxu0 %v2511_v10  ;;  %v2561_v46 = vld [vmem:[%s3127_s2 + $0xc0] ss:$8 sps:$4 sm:$0xff]   ;;  %v2562_v47 = vld [vmem:[%s3127_s2 + $0xd4] ss:$8 sps:$4 sm:$0xff]   ;;  %v2564_v48 = vld [vmem:[%s3127_s2 + $0xd0] ss:$8 sps:$4 sm:$0xff]  }
  0x47   :  { %v2565_v49 = vld [vmem:[%s3127_s2 + $0xe4] ss:$8 sps:$4 sm:$0xff]   ;;  %v2567_v50 = vld [vmem:[%s3127_s2 + $0xe0] ss:$8 sps:$4 sm:$0xff]   ;;  %v2568_v51 = vld [vmem:[%s3127_s2 + $0xf4] ss:$8 sps:$4 sm:$0xff]  }
  0x48   :  { %446 = vmatpush1.bf16.msra.mxu1 %v2534_v25  ;;  %v2570_v52 = vld [vmem:[%s3127_s2 + $0xf0] ss:$8 sps:$4 sm:$0xff]   ;;  %v489_v53 = vld [vmem:[#allocation6] sm:$0xff]  ;;  %v2907_v55 = vld [vmem:[#allocation6 + $0x8] sm:$0xff]  ;;  %s78_s2 = sld [smem:[#allocation8]]  ;;  %vm1484_vm7 = vcmask 261120  }
  0x49   :  { %194 = vmatpush1.bf16.msra.mxu0 %v2513_v12  ;;  %447 = vmatprep.subr.bf16.mxu1 %v2535_v26  ;;  %v493_v54 = vld [vmem:[#allocation6 + $0x20] sm:$0xff]  ;;  %v2909_v58 = vld [vmem:[#allocation6 + $0x28] sm:$0xff]  ;;  %s2181_s18 = sld [smem:[#allocation8 + $0x2]]  ;;  %s2722_s20 = smov [#allocation9]   ;;  %vm2161_vm10 = vcmask 130048  }
  0x4a   :  { %195 = vmatprep.subr.bf16.mxu0 %v2514_v16  ;;  %v2234_v56 = vcombine.low %v489_v53, %v493_v54  ;;  %v2235_v57 = vcombine.high %v489_v53, %v493_v54  ;;  %v497_v59 = vld [vmem:[#allocation6 + $0x40] sm:$0xff]  ;;  %v2236_v61 = vcombine.low %v2907_v55, %v2909_v58  ;;  %v2237_v62 = vcombine.high %v2907_v55, %v2909_v58  ;;  %s2169_s21 = sshll.u32 %s2722_s20, 4  ;;  %s2170_s21 = int_to_ptr.vmem [resolvable:$true] %s2169_s21 }
  0x4b   :  { %v501_v60 = vld [vmem:[#allocation6 + $0x60] sm:$0xff]  ;;  %s2679_s22 = scalar_lea.vmem %s2170_s21, 128  ;;  %p2684_p8 = scmp.lt.s32.totalorder %s2170_s21, %s2170_s21 }
  0x4c   :  { %448 = vmatpush1.bf16.msra.mxu1 %v2537_v29  ;;  %v2243_v63 = vcombine.high %v497_v59, %v501_v60  ;;  %v2242_v0 = vcombine.low %v497_v59, %v501_v60  ;;  %v505_v1 = vld [vmem:[#allocation6 + $0x80] sm:$0xff]  ;;  %p2680_p7 = scmp.ne.s32.totalorder %s2170_s21, %s2679_s22  ;;  %p2685_p9 = scmp.lt.s32.totalorder %s2679_s22, %s2679_s22 }
  0x4d   :  { %196 = vmatpush1.bf16.msra.mxu0 %v2516_v17  ;;  %449 = vmatprep.subr.bf16.mxu1 %v2538_v30  ;;  %v509_v3 = vld [vmem:[#allocation6 + $0xa0] sm:$0xff] }
  0x4e   :  { %197 = vmatprep.subr.bf16.mxu0 %v2517_v21  ;;  %v2251_v4 = vcombine.high %v505_v1, %v509_v3  ;;  %v2250_v5 = vcombine.low %v505_v1, %v509_v3  ;;  %v513_v6 = vld [vmem:[#allocation6 + $0xc0] sm:$0xff]  ;;  %p2686_p10 = por %p2685_p9, %p2684_p8 }
  0x4f   :  { %v517_v7 = vld [vmem:[#allocation6 + $0xe0] sm:$0xff] }
  0x50   :  { %450 = vmatpush1.bf16.msra.mxu1 %v2540_v31  ;;  %v2259_v8 = vcombine.high %v513_v6, %v517_v7  ;;  %v2258_v9 = vcombine.low %v513_v6, %v517_v7  ;;  %v521_v10 = vld [vmem:[#allocation6 + $0x100] sm:$0xff]  ;;  %v510_v6 = vld [vmem:[#allocation6 + $0xa8] sm:$0xff]  ;;  %p2687_p11 = pnand %p2686_p10, %p2680_p7 }
  0x51   :  { %198 = vmatpush1.bf16.msra.mxu0 %v2519_v22  ;;  %451 = vmatprep.subr.bf16.mxu1 %v2541_v32  ;;  %v525_v11 = vld [vmem:[#allocation6 + $0x120] sm:$0xff] }
  0x52   :  { %199 = vmatprep.subr.bf16.mxu0 %v2520_v27  ;;  %v2267_v12 = vcombine.high %v521_v10, %v525_v11  ;;  %v2266_v13 = vcombine.low %v521_v10, %v525_v11  ;;  %v529_v14 = vld [vmem:[#allocation6 + $0x140] sm:$0xff]  ;;  %v518_v10 = vld [vmem:[#allocation6 + $0xe8] sm:$0xff] }
  0x53   :  { %v533_v15 = vld [vmem:[#allocation6 + $0x160] sm:$0xff] }
  0x54   :  { %452 = vmatpush1.bf16.msra.mxu1 %v2543_v34  ;;  %v2275_v16 = vcombine.high %v529_v14, %v533_v15  ;;  %v2274_v17 = vcombine.low %v529_v14, %v533_v15  ;;  %v537_v19 = vld [vmem:[#allocation6 + $0x180] sm:$0xff]  ;;  %v526_v14 = vld [vmem:[#allocation6 + $0x128] sm:$0xff] }
  0x55   :  { %200 = vmatpush1.bf16.msra.mxu0 %v2522_v28  ;;  %453 = vmatprep.subr.bf16.mxu1 %v2544_v35  ;;  %v541_v20 = vld [vmem:[#allocation6 + $0x1a0] sm:$0xff] }
  0x56   :  { %1299 = vmatprep.subr.bf16.mxu0 %v2235_v57  ;;  %v2283_v21 = vcombine.high %v537_v19, %v541_v20  ;;  %v2282_v22 = vcombine.low %v537_v19, %v541_v20  ;;  %v545_v23 = vld [vmem:[#allocation6 + $0x1c0] sm:$0xff]  ;;  %v534_v19 = vld [vmem:[#allocation6 + $0x168] sm:$0xff] }
  0x57   :  { %v549_v24 = vld [vmem:[#allocation6 + $0x1e0] sm:$0xff]  ;;  %v542_v20 = vld [vmem:[#allocation6 + $0x1a8] sm:$0xff] }
  0x58   :  { %2201 = vmatmul.mubr.msk.bf16.vlgmr.msra.gmra.mrb[0].mxu0 %vm2200_vm1, %v2717_v33  ;;  %454 = vmatpush1.bf16.msra.mxu1 %v2546_v36  ;;  %v2291_v25 = vcombine.high %v545_v23, %v549_v24  ;;  %v2290_v26 = vcombine.low %v545_v23, %v549_v24  ;;  %v553_v27 = vld [vmem:[#allocation6 + $0x200] sm:$0xff]  ;;  %v546_v23 = vld [vmem:[#allocation6 + $0x1c8] sm:$0xff] }
  0x59   :  { %455 = vmatprep.subr.bf16.mxu1 %v2547_v37  ;;  %1300 = vmatpush1.bf16.msra.mxu0 %v2234_v56  ;;  %v557_v28 = vld [vmem:[#allocation6 + $0x220] sm:$0xff]  ;;  %v550_v24 = vld [vmem:[#allocation6 + $0x1e8] sm:$0xff] }
  0x5a   :  { %1301 = vmatprep.subr.bf16.mxu0 %v2243_v63  ;;  %v2299_v29 = vcombine.high %v553_v27, %v557_v28  ;;  %v2298_v30 = vcombine.low %v553_v27, %v557_v28  ;;  %v561_v31 = vld [vmem:[#allocation6 + $0x240] sm:$0xff]  ;;  %v502_v63 = vld [vmem:[#allocation6 + $0x68] sm:$0xff] }
  0x5b   :  { %v565_v32 = vld [vmem:[#allocation6 + $0x260] sm:$0xff]  ;;  %v554_v27 = vld [vmem:[#allocation6 + $0x208] sm:$0xff] }
  0x5c   :  { %456 = vmatpush1.bf16.msra.mxu1 %v2549_v38  ;;  %v2307_v33 = vcombine.high %v561_v31, %v565_v32  ;;  %v2306_v34 = vcombine.low %v561_v31, %v565_v32  ;;  %v569_v35 = vld [vmem:[#allocation6 + $0x280] sm:$0xff]  ;;  %v558_v28 = vld [vmem:[#allocation6 + $0x228] sm:$0xff] }
  0x5d   :  { %457 = vmatprep.subr.bf16.mxu1 %v2550_v39  ;;  %1302 = vmatpush1.bf16.msra.mxu0 %v2242_v0  ;;  %v573_v36 = vld [vmem:[#allocation6 + $0x2a0] sm:$0xff]  ;;  %v562_v31 = vld [vmem:[#allocation6 + $0x248] sm:$0xff] }
  0x5e   :  { %1303 = vmatprep.subr.bf16.mxu0 %v2251_v4  ;;  %v2315_v37 = vcombine.high %v569_v35, %v573_v36  ;;  %v2314_v38 = vcombine.low %v569_v35, %v573_v36  ;;  %v577_v39 = vld [vmem:[#allocation6 + $0x2c0] sm:$0xff]  ;;  %v566_v32 = vld [vmem:[#allocation6 + $0x268] sm:$0xff] }
  0x5f   :  { %v570_v35 = vld [vmem:[#allocation6 + $0x288] sm:$0xff] }
  0x60   :  { %458 = vmatpush1.bf16.msra.mxu1 %v2552_v40  ;;  %v581_v40 = vld [vmem:[#allocation6 + $0x2e0] sm:$0xff]  ;;  %v574_v36 = vld [vmem:[#allocation6 + $0x2a8] sm:$0xff] }
  0x61   :  { %459 = vmatprep.subr.bf16.mxu1 %v2553_v41  ;;  %1304 = vmatpush1.bf16.msra.mxu0 %v2250_v5  ;;  %v2323_v41 = vcombine.high %v577_v39, %v581_v40  ;;  %v506_v5 = vld [vmem:[#allocation6 + $0x88] sm:$0xff] }
  0x62   :  { %1305 = vmatprep.subr.bf16.mxu0 %v2259_v8  ;;  %v2253_v8 = vcombine.high %v506_v5, %v510_v6  ;;  %v2252_v11 = vcombine.low %v506_v5, %v510_v6 }
  0x64   :  { %460 = vmatpush1.bf16.msra.mxu1 %v2555_v42  ;;  %v2322_v42 = vcombine.low %v577_v39, %v581_v40  ;;  %v578_v39 = vld [vmem:[#allocation6 + $0x2c8] sm:$0xff] }
  0x65   :  { %461 = vmatprep.subr.bf16.mxu1 %v2556_v43  ;;  %1306 = vmatpush1.bf16.msra.mxu0 %v2258_v9  ;;  %v585_v43 = vld [vmem:[#allocation6 + $0x300] sm:$0xff]  ;;  %v514_v9 = vld [vmem:[#allocation6 + $0xc8] sm:$0xff] }
  0x66   :  { %1307 = vmatprep.subr.bf16.mxu0 %v2267_v12  ;;  %v2261_v12 = vcombine.high %v514_v9, %v518_v10  ;;  %v2260_v15 = vcombine.low %v514_v9, %v518_v10  ;;  %v582_v40 = vld [vmem:[#allocation6 + $0x2e8] sm:$0xff]  ;;  %v495_v9 = vld [vmem:[#allocation6 + $0x30] sm:$0xff]  ;;  %v492_v10 = vld [vmem:[#allocation6 + $0x18] sm:$0xff] }
  0x68   :  { %462 = vmatpush1.bf16.msra.mxu1 %v2558_v44  ;;  %v589_v44 = vld [vmem:[#allocation6 + $0x320] sm:$0xff] }
  0x69   :  { %463 = vmatprep.subr.bf16.mxu1 %v2559_v45  ;;  %1308 = vmatpush1.bf16.msra.mxu0 %v2266_v13  ;;  %v2331_v45 = vcombine.high %v585_v43, %v589_v44  ;;  %v522_v13 = vld [vmem:[#allocation6 + $0x108] sm:$0xff] }
  0x6a   :  { %1309 = vmatprep.subr.bf16.mxu0 %v2275_v16  ;;  %v2269_v16 = vcombine.high %v522_v13, %v526_v14  ;;  %v2268_v55 = vcombine.low %v522_v13, %v526_v14 }
  0x6c   :  { %464 = vmatpush1.bf16.msra.mxu1 %v2561_v46  ;;  %v2330_v46 = vcombine.low %v585_v43, %v589_v44  ;;  %v586_v43 = vld [vmem:[#allocation6 + $0x308] sm:$0xff] }
  0x6d   :  { %465 = vmatprep.subr.bf16.mxu1 %v2562_v47  ;;  %1310 = vmatpush1.bf16.msra.mxu0 %v2274_v17  ;;  %v593_v47 = vld [vmem:[#allocation6 + $0x340] sm:$0xff]  ;;  %v530_v17 = vld [vmem:[#allocation6 + $0x148] sm:$0xff] }
  0x6e   :  { %1311 = vmatprep.subr.bf16.mxu0 %v2283_v21  ;;  %v2277_v58 = vcombine.high %v530_v17, %v534_v19  ;;  %v2276_v21 = vcombine.low %v530_v17, %v534_v19  ;;  %v590_v44 = vld [vmem:[#allocation6 + $0x328] sm:$0xff]  ;;  %v267_v19 = vld [vmem:[%s3128_s3] sm:$0x3] }
  0x70   :  { %466 = vmatpush1.bf16.msra.mxu1 %v2564_v48  ;;  %v597_v48 = vld [vmem:[#allocation6 + $0x360] sm:$0xff] }
  0x71   :  { %467 = vmatprep.subr.bf16.mxu1 %v2565_v49  ;;  %1312 = vmatpush1.bf16.msra.mxu0 %v2282_v22  ;;  %v2339_v49 = vcombine.high %v593_v47, %v597_v48 }
  0x72   :  { %1313 = vmatprep.subr.bf16.mxu0 %v2291_v25 }
  0x74   :  { %468 = vmatpush1.bf16.msra.mxu1 %v2567_v50  ;;  %v2338_v50 = vcombine.low %v593_v47, %v597_v48  ;;  %v594_v47 = vld [vmem:[#allocation6 + $0x348] sm:$0xff] }
  0x75   :  { %469 = vmatprep.subr.bf16.mxu1 %v2568_v51  ;;  %1314 = vmatpush1.bf16.msra.mxu0 %v2290_v26  ;;  %v228_v51 = vstv %s78_s2  ;;  %v2293_v26 = vcombine.high %v546_v23, %v550_v24  ;;  %v598_v48 = vld [vmem:[#allocation6 + $0x368] sm:$0xff] }
  0x76   :  { %1315 = vmatprep.subr.bf16.mxu0 %v2299_v29  ;;  %v2292_v29 = vcombine.low %v546_v23, %v550_v24 }
  0x78   :  { %470 = vmatpush1.bf16.msra.mxu1 %v2570_v52 }
  0x79   :  { %1340 = vmatprep.subr.bf16.mxu1 %v2237_v62  ;;  %1316 = vmatpush1.bf16.msra.mxu0 %v2298_v30  ;;  %v498_v62 = vld [vmem:[#allocation6 + $0x48] sm:$0xff]  ;;  %v2301_v30 = vcombine.high %v554_v27, %v558_v28 }
  0x7a   :  { %1317 = vmatprep.subr.bf16.mxu0 %v2307_v33  ;;  %v2245_v4 = vcombine.high %v498_v62, %v502_v63  ;;  %v2244_v7 = vcombine.low %v498_v62, %v502_v63  ;;  %v2300_v33 = vcombine.low %v554_v27, %v558_v28  ;;  %v609_v63 = vld [vmem:[#allocation6 + $0x3c0] sm:$0xff] }
  0x7d   :  { %1318 = vmatpush1.bf16.msra.mxu0 %v2306_v34  ;;  %v2309_v34 = vcombine.high %v562_v31, %v566_v32 }
  0x7e   :  { %1319 = vmatprep.subr.bf16.mxu0 %v2315_v37  ;;  %v2308_v37 = vcombine.low %v562_v31, %v566_v32  ;;  %v503_v31 = vld [vmem:[#allocation6 + $0x70] sm:$0xff]  ;;  %v500_v32 = vld [vmem:[#allocation6 + $0x58] sm:$0xff] }
  0x81   :  { %1320 = vmatpush1.bf16.msra.mxu0 %v2314_v38  ;;  %v2317_v38 = vcombine.high %v570_v35, %v574_v36 }
  0x82   :  { %1321 = vmatprep.subr.bf16.mxu0 %v2323_v41  ;;  %v2316_v41 = vcombine.low %v570_v35, %v574_v36  ;;  %v507_v36 = vld [vmem:[#allocation6 + $0x90] sm:$0xff] }
  0x85   :  { %1322 = vmatpush1.bf16.msra.mxu0 %v2322_v42  ;;  %v2325_v42 = vcombine.high %v578_v39, %v582_v40 }
  0x86   :  { %1323 = vmatprep.subr.bf16.mxu0 %v2331_v45  ;;  %v2324_v45 = vcombine.low %v578_v39, %v582_v40  ;;  %v511_v39 = vld [vmem:[#allocation6 + $0xb0] sm:$0xff]  ;;  %v508_v40 = vld [vmem:[#allocation6 + $0x98] sm:$0xff] }
  0x89   :  { %1324 = vmatpush1.bf16.msra.mxu0 %v2330_v46  ;;  %v2333_v46 = vcombine.high %v586_v43, %v590_v44 }
  0x8a   :  { %1325 = vmatprep.subr.bf16.mxu0 %v2339_v49  ;;  %v2332_v49 = vcombine.low %v586_v43, %v590_v44  ;;  %v2255_v44 = vcombine.high %v507_v36, %v511_v39 }
  0x8d   :  { %1326 = vmatpush1.bf16.msra.mxu0 %v2338_v50  ;;  %v2341_v50 = vcombine.high %v594_v47, %v598_v48 }
 0x12b   :  { %v219_v52 = vpop.f32.mrb[0].mxu0 }
 0x12c   :  { %vm226_vm2 = vcmp.ge.f32.partialorder %v219_v52, 0.0  ;;  %v229_v53 = vmul.f32 %v228_v51, %v219_v52  ;;  %v221_v54 = vpop.f32.mrb[1].mxu0 }
 0x12d   :  { %v230_v56 = vmul.f32 %v228_v51, %v221_v54  ;;  %v223_v57 = vpop.f32.mrb[2].mxu0  ;;  %vm227_vm3 = vcmp.ge.f32.partialorder %v221_v54, 0.0  ;;  %v2340_v51 = vcombine.low %v594_v47, %v598_v48  ;;  %v519_v47 = vld [vmem:[#allocation6 + $0xf0] sm:$0xff]  ;;  %v516_v48 = vld [vmem:[#allocation6 + $0xd8] sm:$0xff] }
 0x12e   :  { %v231_v59 = vsel %vm226_vm2, %v219_v52, %v229_v53  ;;  %v224_v60 = vpop.f32.mrb[3].mxu0  ;;  %v601_v52 = vld [vmem:[#allocation6 + $0x380] sm:$0xff]  ;;  %v606_v57 = vld [vmem:[#allocation6 + $0x3a8] sm:$0xff] }
 0x12f   :  { %v232_v0 = vsel %vm227_vm3, %v221_v54, %v230_v56  ;;  %v233_v3 = vpack.c.bf16 %v231_v59, %v231_v59  ;;  %v605_v53 = vld [vmem:[#allocation6 + $0x3a0] sm:$0xff]  ;;  %v602_v54 = vld [vmem:[#allocation6 + $0x388] sm:$0xff] }
 0x130   :  { %v234_v1 = vpack.c.bf16 %v232_v0, %v232_v0  ;;  %v2347_v56 = vcombine.high %v601_v52, %v605_v53  ;;  %v2346_v59 = vcombine.low %v601_v52, %v605_v53  ;;  %v2348_v60 = vcombine.low %v602_v54, %v606_v57  ;;  %v613_v0 = vld [vmem:[#allocation6 + $0x3e0] sm:$0xff] }
 0x131   :  { %v2349_v62 = vcombine.high %v602_v54, %v606_v57  ;;  %v2354_v5 = vcombine.low %v609_v63, %v613_v0  ;;  %v523_v54 = vld [vmem:[#allocation6 + $0x110] sm:$0xff]  ;;  %v524_v57 = vld [vmem:[#allocation6 + $0x118] sm:$0xff] }
 0x132   :  { %471 = vmatprep.mubr.bf16.mxu1 %v234_v1  ;;  %1327 = vmatprep.subr.bf16.mxu0 %v2347_v56  ;;  %v610_v1 = vld [vmem:[#allocation6 + $0x3c8] sm:$0xff]  ;;  %v527_v56 = vld [vmem:[#allocation6 + $0x130] sm:$0xff] }
 0x133   :  { %472 = vmatmul.mubr.bf16.vlgmr.msra.gmra.mrb[0].mxu1 %v233_v3  ;;  %1328 = vmatpush1.bf16.msra.mxu0 %v2346_v59  ;;  %v2355_v3 = vcombine.high %v609_v63, %v613_v0  ;;  %v528_v59 = vld [vmem:[#allocation6 + $0x138] sm:$0xff]  ;;  %v2271_v63 = vcombine.high %v523_v54, %v527_v56 }
 0x134   :  { %1341 = vmatpush1.bf16.msra.mxu1 %v2236_v61  ;;  %v538_v61 = vld [vmem:[#allocation6 + $0x188] sm:$0xff]  ;;  %v2273_v0 = vcombine.high %v524_v57, %v528_v59 }
 0x135   :  { %1342 = vmatprep.subr.bf16.mxu1 %v2245_v4  ;;  %v2285_v22 = vcombine.high %v538_v61, %v542_v20  ;;  %v2284_v25 = vcombine.low %v538_v61, %v542_v20  ;;  %v614_v4 = vld [vmem:[#allocation6 + $0x3e8] sm:$0xff]  ;;  %1329 = vmatprep.subr.bf16.mxu0 %v2355_v3  ;;  %v535_v3 = vld [vmem:[#allocation6 + $0x170] sm:$0xff] }
 0x136   :  { %v2356_v6 = vcombine.low %v610_v1, %v614_v4 }
 0x137   :  { %1330 = vmatpush1.bf16.msra.mxu0 %v2354_v5  ;;  %v536_v5 = vld [vmem:[#allocation6 + $0x178] sm:$0xff] }
 0x138   :  { %1343 = vmatpush1.bf16.msra.mxu1 %v2244_v7  ;;  %v2357_v7 = vcombine.high %v610_v1, %v614_v4  ;;  %v531_v1 = vld [vmem:[#allocation6 + $0x150] sm:$0xff]  ;;  %v532_v4 = vld [vmem:[#allocation6 + $0x158] sm:$0xff] }
 0x139   :  { %1344 = vmatprep.subr.bf16.mxu1 %v2253_v8  ;;  %v491_v8 = vld [vmem:[#allocation6 + $0x10] sm:$0xff] }
 0x13a   :  { %v2238_v13 = vcombine.low %v491_v8, %v495_v9 }
 0x13c   :  { %1345 = vmatpush1.bf16.msra.mxu1 %v2252_v11  ;;  %v2239_v11 = vcombine.high %v491_v8, %v495_v9  ;;  %v2279_v8 = vcombine.high %v531_v1, %v535_v3  ;;  %v2281_v9 = vcombine.high %v532_v4, %v536_v5 }
 0x13d   :  { %1346 = vmatprep.subr.bf16.mxu1 %v2261_v12  ;;  %v496_v12 = vld [vmem:[#allocation6 + $0x38] sm:$0xff] }
 0x13e   :  { %v2240_v14 = vcombine.low %v492_v10, %v496_v12  ;;  %1381 = vmatprep.subr.bf16.mxu0 %v2239_v11  ;;  %v543_v11 = vld [vmem:[#allocation6 + $0x1b0] sm:$0xff] }
 0x140   :  { %1347 = vmatpush1.bf16.msra.mxu1 %v2260_v15  ;;  %v2241_v15 = vcombine.high %v492_v10, %v496_v12  ;;  %v539_v10 = vld [vmem:[#allocation6 + $0x190] sm:$0xff]  ;;  %v540_v12 = vld [vmem:[#allocation6 + $0x198] sm:$0xff] }
 0x141   :  { %1348 = vmatprep.subr.bf16.mxu1 %v2269_v16  ;;  %v2919_v16 = vshrl.u32 %v82_v18, 7 }
 0x143   :  { %v271_v17 = vsub.s32 0, %v2919_v16 }
 0x144   :  { %1349 = vmatpush1.bf16.msra.mxu1 %v2268_v55  ;;  %v275_v55 = vsub.s32 1, %v2919_v16 }
 0x145   :  { %1350 = vmatprep.subr.bf16.mxu1 %v2277_v58  ;;  %v272_v58 = vrot.slane %v267_v19, %v271_v17 }
 0x146   :  { %v276_v61 = vrot.slane %v267_v19, %v275_v55  ;;  %v2287_v19 = vcombine.high %v539_v10, %v543_v11 }
 0x148   :  { %1351 = vmatpush1.bf16.msra.mxu1 %v2276_v21  ;;  %v482_v21 = vstv %s2180_s23 }
 0x149   :  { %1352 = vmatprep.subr.bf16.mxu1 %v2285_v22 }
 0x14c   :  { %1353 = vmatpush1.bf16.msra.mxu1 %v2284_v25 }
 0x14d   :  { %1354 = vmatprep.subr.bf16.mxu1 %v2293_v26 }
 0x150   :  { %1355 = vmatpush1.bf16.msra.mxu1 %v2292_v29  ;;  %v499_v29 = vld [vmem:[#allocation6 + $0x50] sm:$0xff] }
 0x151   :  { %1356 = vmatprep.subr.bf16.mxu1 %v2301_v30 }
 0x154   :  { %1357 = vmatpush1.bf16.msra.mxu1 %v2300_v33  ;;  %v504_v33 = vld [vmem:[#allocation6 + $0x78] sm:$0xff] }
 0x155   :  { %1358 = vmatprep.subr.bf16.mxu1 %v2309_v34  ;;  %v2248_v43 = vcombine.low %v500_v32, %v504_v33 }
 0x158   :  { %1359 = vmatpush1.bf16.msra.mxu1 %v2308_v37  ;;  %v2247_v37 = vcombine.high %v499_v29, %v503_v31 }
 0x159   :  { %1360 = vmatprep.subr.bf16.mxu1 %v2317_v38  ;;  %v2249_v38 = vcombine.high %v500_v32, %v504_v33 }
 0x15c   :  { %1361 = vmatpush1.bf16.msra.mxu1 %v2316_v41  ;;  %v512_v41 = vld [vmem:[#allocation6 + $0xb8] sm:$0xff] }
 0x15d   :  { %1362 = vmatprep.subr.bf16.mxu1 %v2325_v42  ;;  %v2246_v42 = vcombine.low %v499_v29, %v503_v31  ;;  %v560_v29 = vld [vmem:[#allocation6 + $0x238] sm:$0xff] }
 0x160   :  { %1363 = vmatpush1.bf16.msra.mxu1 %v2324_v45  ;;  %v2257_v45 = vcombine.high %v508_v40, %v512_v41 }
 0x161   :  { %1364 = vmatprep.subr.bf16.mxu1 %v2333_v46  ;;  %v515_v46 = vld [vmem:[#allocation6 + $0xd0] sm:$0xff] }
 0x162   :  { %v2263_v52 = vcombine.high %v515_v46, %v519_v47 }
 0x164   :  { %1365 = vmatpush1.bf16.msra.mxu1 %v2332_v49  ;;  %v520_v49 = vld [vmem:[#allocation6 + $0xf8] sm:$0xff] }
 0x165   :  { %1366 = vmatprep.subr.bf16.mxu1 %v2341_v50  ;;  %v2254_v50 = vcombine.low %v507_v36, %v511_v39  ;;  %v2265_v53 = vcombine.high %v516_v48, %v520_v49  ;;  %v567_v36 = vld [vmem:[#allocation6 + $0x270] sm:$0xff] }
 0x168   :  { %1367 = vmatpush1.bf16.msra.mxu1 %v2340_v51  ;;  %v2256_v51 = vcombine.low %v508_v40, %v512_v41 }
 0x169   :  { %1368 = vmatprep.subr.bf16.mxu1 %v2349_v62  ;;  %v2264_v62 = vcombine.low %v516_v48, %v520_v49 }
 0x16c   :  { %1369 = vmatpush1.bf16.msra.mxu1 %v2348_v60  ;;  %v2262_v60 = vcombine.low %v515_v46, %v519_v47  ;;  %v576_v46 = vld [vmem:[#allocation6 + $0x2b8] sm:$0xff] }
 0x16d   :  { %1370 = vmatprep.subr.bf16.mxu1 %v2357_v7  ;;  %v2272_v7 = vcombine.low %v524_v57, %v528_v59 }
 0x170   :  { %1371 = vmatpush1.bf16.msra.mxu1 %v2356_v6  ;;  %v2270_v6 = vcombine.low %v523_v54, %v527_v56  ;;  %v584_v54 = vld [vmem:[#allocation6 + $0x2f8] sm:$0xff] }
 0x171   :  { %1422 = vmatprep.subr.bf16.mxu1 %v2241_v15  ;;  %v2280_v15 = vcombine.low %v532_v4, %v536_v5 }
 0x206   :  { %v473_v20 = vpop.f32.mrb[0].mxu1 }
 0x207   :  { %v474_v22 = vadd.f32 %v473_v20, %v272_v58  ;;  %v475_v18 = vpop.f32.mrb[1].mxu1  ;;  %v551_v20 = vld [vmem:[#allocation6 + $0x1f0] sm:$0xff] }
 0x208   :  { %v476_v23 = vadd.f32 %v475_v18, %v276_v61  ;;  %v477_v24 = vpop.f32.mrb[2].mxu1  ;;  %v547_v61 = vld [vmem:[#allocation6 + $0x1d0] sm:$0xff]  ;;  %v2286_v18 = vcombine.low %v539_v10, %v543_v11  ;;  %v600_v10 = vld [vmem:[#allocation6 + $0x378] sm:$0xff] }
 0x209   :  { %vm480_vm4 = vcmp.ge.f32.partialorder %v474_v22, 0.0  ;;  %v483_v25 = vmul.f32 %v482_v21, %v474_v22  ;;  %v478_v26 = vpop.f32.mrb[3].mxu1  ;;  %v2295_v24 = vcombine.high %v547_v61, %v551_v20 }
 0x20a   :  { %vm481_vm5 = vcmp.ge.f32.partialorder %v476_v23, 0.0  ;;  %v484_v27 = vmul.f32 %v482_v21, %v476_v23  ;;  %v548_v21 = vld [vmem:[#allocation6 + $0x1d8] sm:$0xff]  ;;  %v555_v26 = vld [vmem:[#allocation6 + $0x210] sm:$0xff] }
 0x20b   :  { %v485_v28 = vsel %vm480_vm4, %v474_v22, %v483_v25  ;;  %v552_v22 = vld [vmem:[#allocation6 + $0x1f8] sm:$0xff] }
 0x20c   :  { %v486_v30 = vsel %vm481_vm5, %v476_v23, %v484_v27  ;;  %v2930_v35 = vpack.c.bf16 %v485_v28, %v485_v28  ;;  %v2297_v25 = vcombine.high %v548_v21, %v552_v22  ;;  %v559_v27 = vld [vmem:[#allocation6 + $0x230] sm:$0xff]  ;;  %v556_v28 = vld [vmem:[#allocation6 + $0x218] sm:$0xff]  ;;  %v2296_v31 = vcombine.low %v548_v21, %v552_v22 }
 0x20d   :  { %v488_v34 = vpack.c.bf16 %v486_v30, %v486_v30  ;;  %v2294_v30 = vcombine.low %v547_v61, %v551_v20  ;;  %v2303_v32 = vcombine.high %v555_v26, %v559_v27  ;;  %v2305_v33 = vcombine.high %v556_v28, %v560_v29  ;;  %v608_v61 = vld [vmem:[#allocation6 + $0x3b8] sm:$0xff] }
 0x20e   :  { %v2302_v39 = vcombine.low %v555_v26, %v559_v27  ;;  %v2304_v40 = vcombine.low %v556_v28, %v560_v29  ;;  %v616_v26 = vld [vmem:[#allocation6 + $0x3f8] sm:$0xff] }
 0x20f   :  { %1331 = vmatprep.mubr.bf16.mxu0 %v488_v34  ;;  %1372 = vmatprep.mubr.bf16.mxu1 %v488_v34 }
 0x210   :  { %1332 = vmatmul.mubr.bf16.vlgmr.msra.gmra.mrb[4].mxu0 %v2930_v35  ;;  %1373 = vmatmul.mubr.bf16.vlgmr.msra.gmra.mrb[4].mxu1 %v2930_v35 }
 0x211   :  { %1382 = vmatpush1.bf16.msra.mxu0 %v2238_v13  ;;  %1423 = vmatpush1.bf16.msra.mxu1 %v2240_v14  ;;  %v544_v13 = vld [vmem:[#allocation6 + $0x1b8] sm:$0xff]  ;;  %v2278_v14 = vcombine.low %v531_v1, %v535_v3 }
 0x212   :  { %1413 = vmatprep.mubr.bf16.mxu0 %v488_v34  ;;  %1454 = vmatprep.mubr.bf16.mxu1 %v488_v34  ;;  %v2289_v58 = vcombine.high %v540_v12, %v544_v13  ;;  %v2288_v23 = vcombine.low %v540_v12, %v544_v13  ;;  %v563_v34 = vld [vmem:[#allocation6 + $0x250] sm:$0xff]  ;;  %v592_v1 = vld [vmem:[#allocation6 + $0x338] sm:$0xff] }
 0x213   :  { %1383 = vmatprep.subr.bf16.mxu0 %v2247_v37  ;;  %1424 = vmatprep.subr.bf16.mxu1 %v2249_v38  ;;  %v564_v37 = vld [vmem:[#allocation6 + $0x258] sm:$0xff]  ;;  %v2311_v41 = vcombine.high %v563_v34, %v567_v36  ;;  %v2310_v47 = vcombine.low %v563_v34, %v567_v36  ;;  %v2718_v34 = vmov 0.0   ;;  %v2947_v36 = vld [vmem:[%s3131_s6 + $0x8] sm:$0xff]  }
 0x214   :  { %v568_v38 = vld [vmem:[#allocation6 + $0x278] sm:$0xff] }
 0x215   :  { %1384 = vmatpush1.bf16.msra.mxu0 %v2246_v42  ;;  %1425 = vmatpush1.bf16.msra.mxu1 %v2248_v43  ;;  %v2313_v42 = vcombine.high %v564_v37, %v568_v38  ;;  %v571_v43 = vld [vmem:[#allocation6 + $0x290] sm:$0xff]  ;;  %v2312_v48 = vcombine.low %v564_v37, %v568_v38 }
 0x216   :  { %1385 = vmatprep.subr.bf16.mxu0 %v2255_v44  ;;  %1426 = vmatprep.subr.bf16.mxu1 %v2257_v45  ;;  %v575_v44 = vld [vmem:[#allocation6 + $0x2b0] sm:$0xff]  ;;  %v572_v45 = vld [vmem:[#allocation6 + $0x298] sm:$0xff] }
 0x217   :  { %v2319_v49 = vcombine.high %v571_v43, %v575_v44  ;;  %v2318_v56 = vcombine.low %v571_v43, %v575_v44  ;;  %v2320_v57 = vcombine.low %v572_v45, %v576_v46 }
 0x219   :  { %1386 = vmatpush1.bf16.msra.mxu0 %v2254_v50  ;;  %1427 = vmatpush1.bf16.msra.mxu1 %v2256_v51  ;;  %v2321_v50 = vcombine.high %v572_v45, %v576_v46  ;;  %v579_v51 = vld [vmem:[#allocation6 + $0x2d0] sm:$0xff] }
 0x21a   :  { %1387 = vmatprep.subr.bf16.mxu0 %v2263_v52  ;;  %1428 = vmatprep.subr.bf16.mxu1 %v2265_v53  ;;  %v583_v52 = vld [vmem:[#allocation6 + $0x2f0] sm:$0xff]  ;;  %v580_v53 = vld [vmem:[#allocation6 + $0x2d8] sm:$0xff] }
 0x21b   :  { %v2327_v59 = vcombine.high %v579_v51, %v583_v52  ;;  %v2326_v3 = vcombine.low %v579_v51, %v583_v52  ;;  %v2328_v4 = vcombine.low %v580_v53, %v584_v54  ;;  %v2984_v51 = vld [vmem:[%s3133_s8] ss:$0 sm:$0xff] }
 0x21d   :  { %1388 = vmatpush1.bf16.msra.mxu0 %v2262_v60  ;;  %1429 = vmatpush1.bf16.msra.mxu1 %v2264_v62  ;;  %v2329_v60 = vcombine.high %v580_v53, %v584_v54  ;;  %v587_v62 = vld [vmem:[#allocation6 + $0x310] sm:$0xff] }
 0x21e   :  { %1389 = vmatprep.subr.bf16.mxu0 %v2271_v63  ;;  %1430 = vmatprep.subr.bf16.mxu1 %v2273_v0  ;;  %v591_v63 = vld [vmem:[#allocation6 + $0x330] sm:$0xff]  ;;  %v588_v0 = vld [vmem:[#allocation6 + $0x318] sm:$0xff] }
 0x21f   :  { %v2335_v5 = vcombine.high %v587_v62, %v591_v63  ;;  %v2334_v11 = vcombine.low %v587_v62, %v591_v63  ;;  %v2336_v12 = vcombine.low %v588_v0, %v592_v1 }
 0x221   :  { %1390 = vmatpush1.bf16.msra.mxu0 %v2270_v6  ;;  %1431 = vmatpush1.bf16.msra.mxu1 %v2272_v7  ;;  %v2337_v6 = vcombine.high %v588_v0, %v592_v1  ;;  %v595_v7 = vld [vmem:[#allocation6 + $0x350] sm:$0xff] }
 0x222   :  { %1391 = vmatprep.subr.bf16.mxu0 %v2279_v8  ;;  %1432 = vmatprep.subr.bf16.mxu1 %v2281_v9  ;;  %v599_v8 = vld [vmem:[#allocation6 + $0x370] sm:$0xff]  ;;  %v596_v9 = vld [vmem:[#allocation6 + $0x358] sm:$0xff] }
 0x223   :  { %v2343_v13 = vcombine.high %v595_v7, %v599_v8  ;;  %v2342_v20 = vcombine.low %v595_v7, %v599_v8  ;;  %v2344_v21 = vcombine.low %v596_v9, %v600_v10 }
 0x225   :  { %1392 = vmatpush1.bf16.msra.mxu0 %v2278_v14  ;;  %1433 = vmatpush1.bf16.msra.mxu1 %v2280_v15  ;;  %v2345_v14 = vcombine.high %v596_v9, %v600_v10  ;;  %v603_v15 = vld [vmem:[#allocation6 + $0x390] sm:$0xff] }
 0x226   :  { %1393 = vmatprep.subr.bf16.mxu0 %v2287_v19  ;;  %1434 = vmatprep.subr.bf16.mxu1 %v2289_v58  ;;  %v607_v19 = vld [vmem:[#allocation6 + $0x3b0] sm:$0xff]  ;;  %v604_v58 = vld [vmem:[#allocation6 + $0x398] sm:$0xff] }
 0x227   :  { %v2351_v22 = vcombine.high %v603_v15, %v607_v19  ;;  %v2350_v27 = vcombine.low %v603_v15, %v607_v19  ;;  %v2352_v28 = vcombine.low %v604_v58, %v608_v61 }
 0x229   :  { %1394 = vmatpush1.bf16.msra.mxu0 %v2286_v18  ;;  %1435 = vmatpush1.bf16.msra.mxu1 %v2288_v23  ;;  %v2353_v18 = vcombine.high %v604_v58, %v608_v61  ;;  %v611_v23 = vld [vmem:[#allocation6 + $0x3d0] sm:$0xff] }
 0x22a   :  { %1395 = vmatprep.subr.bf16.mxu0 %v2295_v24  ;;  %1436 = vmatprep.subr.bf16.mxu1 %v2297_v25  ;;  %v615_v24 = vld [vmem:[#allocation6 + $0x3f0] sm:$0xff]  ;;  %v612_v25 = vld [vmem:[#allocation6 + $0x3d8] sm:$0xff] }
 0x22b   :  { %v2359_v29 = vcombine.high %v611_v23, %v615_v24 }
 0x22d   :  { %1396 = vmatpush1.bf16.msra.mxu0 %v2294_v30  ;;  %1437 = vmatpush1.bf16.msra.mxu1 %v2296_v31  ;;  %v2361_v30 = vcombine.high %v612_v25, %v616_v26  ;;  %v2358_v31 = vcombine.low %v611_v23, %v615_v24 }
 0x22e   :  { %1397 = vmatprep.subr.bf16.mxu0 %v2303_v32  ;;  %1438 = vmatprep.subr.bf16.mxu1 %v2305_v33  ;;  %v2360_v32 = vcombine.low %v612_v25, %v616_v26  ;;  %v2937_v33 = vld [vmem:[%s3131_s6] sm:$0xff]  }
 0x231   :  { %1398 = vmatpush1.bf16.msra.mxu0 %v2302_v39  ;;  %1439 = vmatpush1.bf16.msra.mxu1 %v2304_v40 }
 0x232   :  { %1399 = vmatprep.subr.bf16.mxu0 %v2311_v41  ;;  %1440 = vmatprep.subr.bf16.mxu1 %v2313_v42 }
 0x235   :  { %1400 = vmatpush1.bf16.msra.mxu0 %v2310_v47  ;;  %1441 = vmatpush1.bf16.msra.mxu1 %v2312_v48 }
 0x236   :  { %1401 = vmatprep.subr.bf16.mxu0 %v2319_v49  ;;  %1442 = vmatprep.subr.bf16.mxu1 %v2321_v50 }
 0x239   :  { %1402 = vmatpush1.bf16.msra.mxu0 %v2318_v56  ;;  %1443 = vmatpush1.bf16.msra.mxu1 %v2320_v57 }
 0x23a   :  { %1403 = vmatprep.subr.bf16.mxu0 %v2327_v59  ;;  %1444 = vmatprep.subr.bf16.mxu1 %v2329_v60  ;;  %v2991_v59 = vld [vmem:[%s3130_s5] sm:$0xff]  ;;  %s2721_s5 = smov 96  }
 0x23b   :  { %v622_v60 = vrot.slane %v2991_v59, %v271_v17 }
 0x23d   :  { %1404 = vmatpush1.bf16.msra.mxu0 %v2326_v3  ;;  %1445 = vmatpush1.bf16.msra.mxu1 %v2328_v4 }
 0x23e   :  { %1405 = vmatprep.subr.bf16.mxu0 %v2335_v5  ;;  %1446 = vmatprep.subr.bf16.mxu1 %v2337_v6 }
 0x241   :  { %1406 = vmatpush1.bf16.msra.mxu0 %v2334_v11  ;;  %1447 = vmatpush1.bf16.msra.mxu1 %v2336_v12 }
 0x242   :  { %1407 = vmatprep.subr.bf16.mxu0 %v2343_v13  ;;  %1448 = vmatprep.subr.bf16.mxu1 %v2345_v14 }
 0x245   :  { %1408 = vmatpush1.bf16.msra.mxu0 %v2342_v20  ;;  %1449 = vmatpush1.bf16.msra.mxu1 %v2344_v21 }
 0x246   :  { %1409 = vmatprep.subr.bf16.mxu0 %v2351_v22  ;;  %1450 = vmatprep.subr.bf16.mxu1 %v2353_v18  ;;  %v626_v22 = vrot.slane %v2991_v59, %v275_v55 }
 0x249   :  { %1410 = vmatpush1.bf16.msra.mxu0 %v2350_v27  ;;  %1451 = vmatpush1.bf16.msra.mxu1 %v2352_v28 }
 0x24a   :  { %1411 = vmatprep.subr.bf16.mxu0 %v2359_v29  ;;  %1452 = vmatprep.subr.bf16.mxu1 %v2361_v30 }
 0x24d   :  { %1412 = vmatpush1.bf16.msra.mxu0 %v2358_v31  ;;  %1453 = vmatpush1.bf16.msra.mxu1 %v2360_v32 }
 0x24e   :  { %2413 = vmatprep.subr.bf16.mxu0 %v2718_v34  ;;  %2453 = vmatprep.subr.bf16.mxu1 %v2718_v34 }
 0x250   :  { %1414 = vmatmul.mubr.bf16.vlgmr.msra.gmra.mrb[8].mxu0 %v2930_v35  ;;  %1455 = vmatmul.mubr.bf16.vlgmr.msra.gmra.mrb[8].mxu1 %v2930_v35 }
 0x251   :  { %2414 = vmatpush3.bf16.msra.mxu0 %v2937_v33  ;;  %2417 = vmatprep.mubr.msk.bf16.mxu0 %vm2719_vm6, %v2718_v34 }
 0x252   :  { %2415 = vmatprep.subr.bf16.mxu0 %v2718_v34  ;;  %2454 = vmatpush3.bf16.msra.mxu1 %v2937_v33 }
 0x253   :  { %2455 = vmatprep.subr.bf16.mxu1 %v2718_v34  ;;  %2457 = vmatprep.mubr.msk.bf16.mxu1 %vm2719_vm6, %v2718_v34 }
 0x255   :  { %2416 = vmatpush3.bf16.msra.mxu0 %v2947_v36 }
 0x256   :  { %2421 = vmatprep.subr.bf16.mxu0 %v2718_v34  ;;  %2456 = vmatpush3.bf16.msra.mxu1 %v2947_v36 }
 0x257   :  { %2469 = vmatprep.subr.bf16.mxu1 %v2718_v34 }
 0x258   :  { %2418 = vmatmul.mubr.bf16.vlgmr.msra.gmra.mrb[12].mxu0 %v2716_v2 }
 0x259   :  { %2422 = vmatpush3.bf16.msra.mxu0 %v2937_v33  ;;  %2425 = vmatprep.mubr.msk.bf16.mxu0 %vm2719_vm6, %v2718_v34 }
 0x25a   :  { %2423 = vmatprep.subr.bf16.mxu0 %v2718_v34 }
 0x25d   :  { %2424 = vmatpush3.bf16.msra.mxu0 %v2947_v36 }
 0x25e   :  { %2429 = vmatprep.subr.bf16.mxu0 %v2718_v34 }
 0x2e3   :  { %v1333_v35 = vpop.f32.mrb[4].mxu0  ;;  %v2967_v37 = vpop.f32.mrb[4].mxu1 }
 0x2e4   :  { %v2969_v38 = vpop.f32.mrb[5].mxu0  ;;  %v2971_v39 = vpop.f32.mrb[5].mxu1  ;;  %v1334_v62 = vadd.f32 %v1333_v35, %v622_v60 }
 0x2e5   :  { %v1337_v40 = vpop.f32.mrb[6].mxu0  ;;  %v1378_v2 = vpop.f32.mrb[6].mxu1  ;;  %v1336_v18 = vadd.f32 %v2969_v38, %v626_v22 }
 0x2e6   :  { %v1338_v41 = vpop.f32.mrb[7].mxu0  ;;  %v1379_v42 = vpop.f32.mrb[7].mxu1 }
 0x323   :  { %v2973_v43 = vpop.f32.mrb[8].mxu0  ;;  %v2975_v44 = vpop.f32.mrb[8].mxu1 }
 0x324   :  { %v2977_v45 = vpop.f32.mrb[9].mxu0  ;;  %v2979_v46 = vpop.f32.mrb[9].mxu1 }
 0x325   :  { %v1419_v47 = vpop.f32.mrb[10].mxu0  ;;  %v1460_v48 = vpop.f32.mrb[10].mxu1 }
 0x326   :  { %v1420_v49 = vpop.f32.mrb[11].mxu0  ;;  %v1461_v50 = vpop.f32.mrb[11].mxu1 }
 0x32b   :  { %v1522_v52 = vpop.f32.mrb[12].mxu0 }
 0x32c   :  { %v1523_v53 = vadd.f32 %v2984_v51, %v1522_v52  ;;  %v2419_v54 = vpop.f32.mrb[13].mxu0 }
 0x32d   :  { %v1525_v56 = vpop.f32.mrb[14].mxu0 }
 0x32e   :  { %1536 = vrot.lane.b32.xlu0 %v1523_v53, %s2720_s27  ;;  %v2420_v57 = vpop.f32.mrb[15].mxu0  ;;  %v1528_v63 = vadd.f32 %v1523_v53, %v1334_v62  ;;  %v629_v53 = vsub.s32 2, %v2919_v16 }
 0x330   :  { %v2365_v0 = vmul.f32 -1.442695, %v1528_v63  ;;  %v630_v54 = vrot.slane %v2991_v59, %v629_v53 }
 0x332   :  { %2575 = vpow2.f32 %v2365_v0  ;;  %v1375_v56 = vadd.f32 %v2967_v37, %v630_v54 }
 0x33c   :  { %v2576_v1 = vpop.eup %2575 }
 0x33d   :  { %v1532_v3 = vadd.f32 1.0, %v2576_v1 }
 0x33f   :  { %2577 = vrcp.f32 %v1532_v3 }
 0x349   :  { %v2578_v4 = vpop.eup %2577 }
 0x34a   :  { %v1546_v17 = vsub.f32 1.0, %v2578_v4  ;;  %v1552_v11 = vmul.f32 0.0, %v2578_v4 }
 0x3a0   :  { %v1537_v5 = vpop.permute.xlu0 %1536 }
 0x3a1   :  { %v1539_v6 = vmul.f32 %v2578_v4, %v1537_v5 }
 0x3a3   :  { %1541 = vrot.lane.b32.xlu0 %v1539_v6, %s2720_s27 }
 0x415   :  { %v1542_v7 = vpop.permute.xlu0 %1541 }
 0x416   :  { %v1544_v8 = vadd.f32 %v1542_v7, %v1334_v62 }
 0x418   :  { %2579 = vtanh.f32 %v1544_v8 }
 0x422   :  { %v2580_v9 = vpop.eup %2579 }
 0x423   :  { %1548 = vrot.lane.b32.xlu1 %v2580_v9, %s2721_s5 }
 0x495   :  { %v1549_v10 = vpop.permute.xlu1 %1548 }
 0x496   :  { %v1551_v12 = vmul.f32 %v1549_v10, %v1546_v17 }
 0x498   :  { %v1553_v13 = vadd.f32 %v1552_v11, %v1551_v12 }
 0x49a   :  { %v1554_v14 = vpack.c.bf16 %v1553_v13, %v1553_v13 }
 0x49c   :  { %1556 = vrot.lane.b32.xlu1 %v1554_v14, %s2721_s5 }
 0x50e   :  { %v1557_v15 = vpop.permute.xlu1 %1556 }
 0x50f   :  { %2426 = vmatmul.mubr.msk.bf16.vlgmr.msra.gmra.mrb[16].mxu0 %vm1484_vm7, %v1557_v15 }
 0x510   :  { %2430 = vmatpush3.bf16.msra.mxu0 %v2937_v33  ;;  %2433 = vmatprep.mubr.msk.bf16.mxu0 %vm2719_vm6, %v2718_v34 }
 0x511   :  { %2431 = vmatprep.subr.bf16.mxu0 %v2718_v34 }
 0x514   :  { %2432 = vmatpush3.bf16.msra.mxu0 %v2947_v36 }
 0x515   :  { %2437 = vmatprep.subr.bf16.mxu0 %v2718_v34 }
 0x5e2   :  { %v1595_v19 = vpop.f32.mrb[16].mxu0 }
 0x5e3   :  { %v1596_v58 = vadd.f32 %v2984_v51, %v1595_v19  ;;  %v2427_v61 = vpop.f32.mrb[17].mxu0 }
 0x5e4   :  { %v1598_v20 = vpop.f32.mrb[18].mxu0 }
 0x5e5   :  { %1609 = vrot.lane.b32.xlu0 %v1596_v58, %s2720_s27  ;;  %v2428_v21 = vpop.f32.mrb[19].mxu0  ;;  %v1601_v23 = vadd.f32 %v1596_v58, %v1336_v18  ;;  %v633_v58 = vsub.s32 3, %v2919_v16 }
 0x5e7   :  { %v2367_v24 = vmul.f32 -1.442695, %v1601_v23  ;;  %v634_v61 = vrot.slane %v2991_v59, %v633_v58 }
 0x5e9   :  { %2581 = vpow2.f32 %v2367_v24  ;;  %v1377_v20 = vadd.f32 %v2971_v39, %v634_v61 }
 0x5f3   :  { %v2582_v25 = vpop.eup %2581 }
 0x5f4   :  { %v1605_v26 = vadd.f32 1.0, %v2582_v25 }
 0x5f6   :  { %2583 = vrcp.f32 %v1605_v26 }
 0x600   :  { %v2584_v27 = vpop.eup %2583 }
 0x601   :  { %v1619_v55 = vsub.f32 1.0, %v2584_v27  ;;  %v1625_v38 = vmul.f32 %v2584_v27, %v1553_v13 }
 0x657   :  { %v1610_v28 = vpop.permute.xlu0 %1609 }
 0x658   :  { %v1612_v29 = vmul.f32 %v2584_v27, %v1610_v28 }
 0x65a   :  { %1614 = vrot.lane.b32.xlu1 %v1612_v29, %s2720_s27 }
 0x6cc   :  { %v1615_v30 = vpop.permute.xlu1 %1614 }
 0x6cd   :  { %v1617_v31 = vadd.f32 %v1615_v30, %v1336_v18 }
 0x6cf   :  { %2585 = vtanh.f32 %v1617_v31 }
 0x6d9   :  { %v2586_v32 = vpop.eup %2585 }
 0x6da   :  { %1621 = vrot.lane.b32.xlu0 %v2586_v32, %s2721_s5 }
 0x74c   :  { %v1622_v35 = vpop.permute.xlu0 %1621 }
 0x74d   :  { %v1624_v40 = vmul.f32 %v1622_v35, %v1619_v55 }
 0x74f   :  { %v1626_v2 = vadd.f32 %v1625_v38, %v1624_v40 }
 0x751   :  { %v1627_v41 = vpack.c.bf16 %v1626_v2, %v1626_v2 }
 0x753   :  { %1629 = vrot.lane.b32.xlu1 %v1627_v41, %s2721_s5 }
 0x7c5   :  { %v1630_v42 = vpop.permute.xlu1 %1629 }
 0x7c6   :  { %2434 = vmatmul.mubr.msk.bf16.vlgmr.msra.gmra.mrb[20].mxu0 %vm1484_vm7, %v1630_v42 }
 0x7c7   :  { %2438 = vmatpush3.bf16.msra.mxu0 %v2937_v33  ;;  %2441 = vmatprep.mubr.msk.bf16.mxu0 %vm2719_vm6, %v2718_v34 }
 0x7c8   :  { %2439 = vmatprep.subr.bf16.mxu0 %v2718_v34 }
 0x7cb   :  { %2440 = vmatpush3.bf16.msra.mxu0 %v2947_v36 }
 0x7cc   :  { %2445 = vmatprep.subr.bf16.mxu0 %v2718_v34 }
 0x899   :  { %v1668_v47 = vpop.f32.mrb[20].mxu0 }
 0x89a   :  { %v1669_v48 = vadd.f32 %v2984_v51, %v1668_v47  ;;  %v2435_v49 = vpop.f32.mrb[21].mxu0 }
 0x89b   :  { %v1671_v50 = vpop.f32.mrb[22].mxu0 }
 0x89c   :  { %1682 = vrot.lane.b32.xlu0 %v1669_v48, %s2720_s27  ;;  %v2436_v52 = vpop.f32.mrb[23].mxu0  ;;  %v1674_v57 = vadd.f32 %v1669_v48, %v1375_v56  ;;  %v637_v48 = vsub.s32 4, %v2919_v16 }
 0x89e   :  { %v2369_v60 = vmul.f32 -1.442695, %v1674_v57  ;;  %v638_v49 = vrot.slane %v2991_v59, %v637_v48 }
 0x8a0   :  { %2587 = vpow2.f32 %v2369_v60  ;;  %v1416_v50 = vadd.f32 %v2973_v43, %v638_v49 }
 0x8aa   :  { %v2588_v62 = vpop.eup %2587 }
 0x8ab   :  { %v1678_v63 = vadd.f32 1.0, %v2588_v62 }
 0x8ad   :  { %2589 = vrcp.f32 %v1678_v63 }
 0x8b7   :  { %v2590_v0 = vpop.eup %2589 }
 0x8b8   :  { %v1692_v7 = vsub.f32 1.0, %v2590_v0  ;;  %v1698_v37 = vmul.f32 %v2590_v0, %v1626_v2 }
 0x90e   :  { %v1683_v1 = vpop.permute.xlu0 %1682 }
 0x90f   :  { %v1685_v3 = vmul.f32 %v2590_v0, %v1683_v1 }
 0x911   :  { %1687 = vrot.lane.b32.xlu1 %v1685_v3, %s2720_s27 }
 0x983   :  { %v1688_v4 = vpop.permute.xlu1 %1687 }
 0x984   :  { %v1690_v5 = vadd.f32 %v1688_v4, %v1375_v56 }
 0x986   :  { %2591 = vtanh.f32 %v1690_v5 }
 0x990   :  { %v2592_v6 = vpop.eup %2591 }
 0x991   :  { %1694 = vrot.lane.b32.xlu0 %v2592_v6, %s2721_s5 }
 0xa03   :  { %v1695_v8 = vpop.permute.xlu0 %1694 }
 0xa04   :  { %v1697_v9 = vmul.f32 %v1695_v8, %v1692_v7 }
 0xa06   :  { %v1699_v17 = vadd.f32 %v1698_v37, %v1697_v9 }
 0xa08   :  { %v1700_v10 = vpack.c.bf16 %v1699_v17, %v1699_v17 }
 0xa0a   :  { %1702 = vrot.lane.b32.xlu1 %v1700_v10, %s2721_s5 }
 0xa7c   :  { %v1703_v11 = vpop.permute.xlu1 %1702 }
 0xa7d   :  { %2442 = vmatmul.mubr.msk.bf16.vlgmr.msra.gmra.mrb[24].mxu0 %vm1484_vm7, %v1703_v11 }
 0xa7e   :  { %2446 = vmatpush3.bf16.msra.mxu0 %v2937_v33  ;;  %2449 = vmatprep.mubr.msk.bf16.mxu0 %vm2719_vm6, %v2718_v34 }
 0xa7f   :  { %2447 = vmatprep.subr.bf16.mxu0 %v2718_v34 }
 0xa82   :  { %2448 = vmatpush3.bf16.msra.mxu0 %v2947_v36 }
 0xa83   :  { %2461 = vmatprep.subr.bf16.mxu0 %v2718_v34 }
 0xb50   :  { %v1741_v12 = vpop.f32.mrb[24].mxu0 }
 0xb51   :  { %v1742_v13 = vadd.f32 %v2984_v51, %v1741_v12  ;;  %v2443_v14 = vpop.f32.mrb[25].mxu0  ;;  %v641_v12 = vsub.s32 5, %v2919_v16 }
 0xb52   :  { %v1744_v15 = vpop.f32.mrb[26].mxu0 }
 0xb53   :  { %1755 = vrot.lane.b32.xlu0 %v1742_v13, %s2720_s27  ;;  %v2444_v19 = vpop.f32.mrb[27].mxu0  ;;  %v1747_v21 = vadd.f32 %v1742_v13, %v1377_v20  ;;  %v642_v13 = vrot.slane %v2991_v59, %v641_v12  ;;  %v2380_v12 = vld [vmem:[%s3133_s8 + $0x1] ss:$0 sm:$0xff] }
 0xb55   :  { %v2371_v22 = vmul.f32 -1.442695, %v1747_v21 }
 0xb57   :  { %2593 = vpow2.f32 %v2371_v22 }
 0xb61   :  { %v2594_v18 = vpop.eup %2593 }
 0xb62   :  { %v1751_v23 = vadd.f32 1.0, %v2594_v18 }
 0xb64   :  { %2595 = vrcp.f32 %v1751_v23 }
 0xb6e   :  { %v2596_v24 = vpop.eup %2595 }
 0xb6f   :  { %v1765_v30 = vsub.f32 1.0, %v2596_v24  ;;  %v1771_v39 = vmul.f32 %v2596_v24, %v1699_v17 }
 0xbc5   :  { %v1756_v25 = vpop.permute.xlu0 %1755 }
 0xbc6   :  { %v1758_v26 = vmul.f32 %v2596_v24, %v1756_v25 }
 0xbc8   :  { %1760 = vrot.lane.b32.xlu1 %v1758_v26, %s2720_s27 }
 0xc3a   :  { %v1761_v27 = vpop.permute.xlu1 %1760 }
 0xc3b   :  { %v1763_v28 = vadd.f32 %v1761_v27, %v1377_v20 }
 0xc3d   :  { %2597 = vtanh.f32 %v1763_v28 }
 0xc47   :  { %v2598_v29 = vpop.eup %2597 }
 0xc48   :  { %1767 = vrot.lane.b32.xlu0 %v2598_v29, %s2721_s5 }
 0xcba   :  { %v1768_v31 = vpop.permute.xlu0 %1767 }
 0xcbb   :  { %v1770_v32 = vmul.f32 %v1768_v31, %v1765_v30 }
 0xcbd   :  { %v1772_v55 = vadd.f32 %v1771_v39, %v1770_v32 }
 0xcbf   :  { %v1773_v35 = vpack.c.bf16 %v1772_v55, %v1772_v55 }
 0xcc1   :  { %1775 = vrot.lane.b32.xlu1 %v1773_v35, %s2721_s5 }
 0xd33   :  { %v1776_v38 = vpop.permute.xlu1 %1775 }
 0xd34   :  { %2450 = vmatmul.mubr.msk.bf16.vlgmr.msra.gmra.mrb[28].mxu0 %vm1484_vm7, %v1776_v38 }
 0xd35   :  { %2462 = vmatpush3.bf16.msra.mxu0 %v2937_v33  ;;  %2465 = vmatprep.mubr.msk.bf16.mxu0 %vm2719_vm6, %v2718_v34 }
 0xd36   :  { %2463 = vmatprep.subr.bf16.mxu0 %v2718_v34 }
 0xd39   :  { %2464 = vmatpush3.bf16.msra.mxu0 %v2947_v36 }
 0xd3a   :  { %2477 = vmatprep.subr.bf16.mxu0 %v2718_v34 }
 0xe07   :  { %v1814_v40 = vpop.f32.mrb[28].mxu0 }
 0xe08   :  { %v1815_v2 = vadd.f32 %v2984_v51, %v1814_v40  ;;  %v2451_v41 = vpop.f32.mrb[29].mxu0 }
 0xe09   :  { %v1817_v42 = vpop.f32.mrb[30].mxu0 }
 0xe0a   :  { %1828 = vrot.lane.b32.xlu0 %v1815_v2, %s2720_s27  ;;  %v2452_v47 = vpop.f32.mrb[31].mxu0  ;;  %v1820_v52 = vadd.f32 %v1815_v2, %v1416_v50 }
 0xe0c   :  { %v2373_v53 = vmul.f32 -1.442695, %v1820_v52 }
 0xe0e   :  { %2599 = vpow2.f32 %v2373_v53 }
 0xe18   :  { %v2600_v54 = vpop.eup %2599 }
 0xe19   :  { %v1824_v56 = vadd.f32 1.0, %v2600_v54 }
 0xe1b   :  { %2601 = vrcp.f32 %v1824_v56 }
 0xe25   :  { %v2602_v57 = vpop.eup %2601 }
 0xe26   :  { %v1838_v3 = vsub.f32 1.0, %v2602_v57  ;;  %v1844_v43 = vmul.f32 %v2602_v57, %v1772_v55  ;;  %v645_v55 = vsub.s32 6, %v2919_v16 }
 0xe28   :  { %v646_v35 = vrot.slane %v2991_v59, %v645_v55 }
 0xe2a   :  { %v1457_v38 = vadd.f32 %v2975_v44, %v646_v35 }
 0xe7c   :  { %v1829_v60 = vpop.permute.xlu0 %1828 }
 0xe7d   :  { %v1831_v62 = vmul.f32 %v2602_v57, %v1829_v60 }
 0xe7f   :  { %1833 = vrot.lane.b32.xlu1 %v1831_v62, %s2720_s27 }
 0xef1   :  { %v1834_v63 = vpop.permute.xlu1 %1833 }
 0xef2   :  { %v1836_v0 = vadd.f32 %v1834_v63, %v1416_v50 }
 0xef4   :  { %2603 = vtanh.f32 %v1836_v0 }
 0xefe   :  { %v2604_v1 = vpop.eup %2603 }
 0xeff   :  { %1840 = vrot.lane.b32.xlu0 %v2604_v1, %s2721_s5 }
 0xf71   :  { %v1841_v4 = vpop.permute.xlu0 %1840 }
 0xf72   :  { %v1843_v5 = vmul.f32 %v1841_v4, %v1838_v3 }
 0xf74   :  { %v1845_v6 = vadd.f32 %v1844_v43, %v1843_v5  ;;  %v649_v5 = vsub.s32 7, %v2919_v16 }
 0xf76   :  { %v1846_v7 = vpack.c.bf16 %v1845_v6, %v1845_v6 }
 0xf78   :  { %1848 = vrot.lane.b32.xlu1 %v1846_v7, %s2721_s5 }
 0xfea   :  { %v1849_v8 = vpop.permute.xlu1 %1848 }
 0xfeb   :  { %2458 = vmatmul.mubr.msk.bf16.vlgmr.msra.gmra.mrb[12].mxu1 %vm1484_vm7, %v1849_v8 }
 0xfec   :  { %2470 = vmatpush3.bf16.msra.mxu1 %v2937_v33  ;;  %2473 = vmatprep.mubr.msk.bf16.mxu1 %vm2719_vm6, %v2718_v34  ;;  %v1418_v33 = vadd.f32 %v2977_v45, %v642_v13  ;;  %v2573_v13 = vld [vmem:[%s3132_s7] sm:$0xff]  }
 0xfed   :  { %2471 = vmatprep.subr.bf16.mxu1 %v2718_v34 }
 0xff0   :  { %2472 = vmatpush3.bf16.msra.mxu1 %v2947_v36 }
0x10be   :  { %v1887_v37 = vpop.f32.mrb[12].mxu1 }
0x10bf   :  { %v1888_v9 = vadd.f32 %v2984_v51, %v1887_v37  ;;  %v2459_v17 = vpop.f32.mrb[13].mxu1 }
0x10c0   :  { %v1890_v10 = vpop.f32.mrb[14].mxu1 }
0x10c1   :  { %1901 = vrot.lane.b32.xlu0 %v1888_v9, %s2720_s27  ;;  %v2460_v11 = vpop.f32.mrb[15].mxu1  ;;  %v1893_v14 = vadd.f32 %v1888_v9, %v1418_v33 }
0x10c3   :  { %v2375_v15 = vmul.f32 -1.442695, %v1893_v14  ;;  %v2574_v14 = vld [vmem:[%s3132_s7 + $0x8] sm:$0xff]   ;;  %s2182_s7 = sld [smem:[#allocation8 + $0x3]] }
0x10c5   :  { %2605 = vpow2.f32 %v2375_v15 }
0x10cf   :  { %v2606_v19 = vpop.eup %2605 }
0x10d0   :  { %v1897_v58 = vadd.f32 1.0, %v2606_v19 }
0x10d2   :  { %2607 = vrcp.f32 %v1897_v58 }
0x10dc   :  { %v2608_v36 = vpop.eup %2607 }
0x10dd   :  { %v1911_v23 = vsub.f32 1.0, %v2608_v36  ;;  %v1917_v45 = vmul.f32 %v2608_v36, %v1845_v6  ;;  %v650_v6 = vrot.slane %v2991_v59, %v649_v5 }
0x10df   :  { %v1459_v7 = vadd.f32 %v2979_v46, %v650_v6 }
0x1133   :  { %v1902_v61 = vpop.permute.xlu0 %1901 }
0x1134   :  { %v1904_v20 = vmul.f32 %v2608_v36, %v1902_v61 }
0x1136   :  { %1906 = vrot.lane.b32.xlu1 %v1904_v20, %s2720_s27 }
0x11a8   :  { %v1907_v21 = vpop.permute.xlu1 %1906 }
0x11a9   :  { %v1909_v22 = vadd.f32 %v1907_v21, %v1418_v33  ;;  %v2381_v33 = vld [vmem:[%s3133_s8 + $0x2] ss:$0 sm:$0xff] }
0x11ab   :  { %2609 = vtanh.f32 %v1909_v22 }
0x11b5   :  { %v2610_v18 = vpop.eup %2609 }
0x11b6   :  { %1913 = vrot.lane.b32.xlu0 %v2610_v18, %s2721_s5  ;;  %v2087_v18 = vstv %s2181_s18 }
0x1228   :  { %v1914_v24 = vpop.permute.xlu0 %1913 }
0x1229   :  { %v1916_v25 = vmul.f32 %v1914_v24, %v1911_v23 }
0x122b   :  { %v1918_v26 = vadd.f32 %v1917_v45, %v1916_v25 }
0x122d   :  { %v1919_v27 = vpack.c.bf16 %v1918_v26, %v1918_v26 }
0x122f   :  { %1921 = vrot.lane.b32.xlu1 %v1919_v27, %s2721_s5 }
0x12a1   :  { %v1922_v28 = vpop.permute.xlu1 %1921 }
0x12a2   :  { %2466 = vmatmul.mubr.msk.bf16.vlgmr.msra.gmra.mrb[32].mxu0 %vm1484_vm7, %v1922_v28  ;;  %v2158_v28 = vstv %s2182_s7 }
0x12a3   :  { %2481 = vmatprep.mubr.msk.bf16.mxu0 %vm2719_vm6, %v2718_v34  ;;  %2478 = vmatpush3.bf16.msra.mxu0 %v2573_v13 }
0x12a4   :  { %2479 = vmatprep.subr.bf16.mxu0 %v2718_v34 }
0x12a7   :  { %2480 = vmatpush3.bf16.msra.mxu0 %v2574_v14 }
0x1375   :  { %v1960_v29 = vpop.f32.mrb[32].mxu0 }
0x1376   :  { %v1961_v30 = vadd.f32 %v2984_v51, %v1960_v29  ;;  %v2467_v31 = vpop.f32.mrb[33].mxu0 }
0x1377   :  { %v1963_v39 = vpop.f32.mrb[34].mxu0 }
0x1378   :  { %1974 = vrot.lane.b32.xlu0 %v1961_v30, %s2720_s27  ;;  %v2468_v32 = vpop.f32.mrb[35].mxu0  ;;  %v1966_v40 = vadd.f32 %v1961_v30, %v1457_v38 }
0x137a   :  { %v2377_v2 = vmul.f32 -1.442695, %v1966_v40 }
0x137c   :  { %2611 = vpow2.f32 %v2377_v2 }
0x1386   :  { %v2612_v41 = vpop.eup %2611 }
0x1387   :  { %v1970_v42 = vadd.f32 1.0, %v2612_v41 }
0x1389   :  { %2613 = vrcp.f32 %v1970_v42 }
0x1393   :  { %v2614_v47 = vpop.eup %2613 }
0x1394   :  { %v1984_v54 = vsub.f32 1.0, %v2614_v47  ;;  %v1990_v44 = vmul.f32 %v2614_v47, %v1918_v26  ;;  %v2382_v26 = vld [vmem:[%s3133_s8 + $0x3] ss:$0 sm:$0xff] }
0x13ea   :  { %v1975_v48 = vpop.permute.xlu0 %1974 }
0x13eb   :  { %v1977_v49 = vmul.f32 %v2614_v47, %v1975_v48 }
0x13ed   :  { %1979 = vrot.lane.b32.xlu1 %v1977_v49, %s2720_s27 }
0x145f   :  { %v1980_v50 = vpop.permute.xlu1 %1979 }
0x1460   :  { %v1982_v52 = vadd.f32 %v1980_v50, %v1457_v38 }
0x1462   :  { %2615 = vtanh.f32 %v1982_v52 }
0x146c   :  { %v2616_v53 = vpop.eup %2615 }
0x146d   :  { %1986 = vrot.lane.b32.xlu0 %v2616_v53, %s2721_s5 }
0x14df   :  { %v1987_v56 = vpop.permute.xlu0 %1986 }
0x14e0   :  { %v1989_v57 = vmul.f32 %v1987_v56, %v1984_v54 }
0x14e2   :  { %v1991_v60 = vadd.f32 %v1990_v44, %v1989_v57 }
0x14e4   :  { %v1992_v62 = vpack.c.bf16 %v1991_v60, %v1991_v60 }
0x14e6   :  { %1994 = vrot.lane.b32.xlu1 %v1992_v62, %s2721_s5 }
0x1558   :  { %v1995_v63 = vpop.permute.xlu1 %1994 }
0x1559   :  { %2474 = vmatmul.mubr.msk.bf16.vlgmr.msra.gmra.mrb[16].mxu1 %vm1484_vm7, %v1995_v63 }
0x162c   :  { %v2033_v0 = vpop.f32.mrb[16].mxu1 }
0x162d   :  { %v2034_v1 = vadd.f32 %v2984_v51, %v2033_v0  ;;  %v2475_v3 = vpop.f32.mrb[17].mxu1 }
0x162e   :  { %v2036_v4 = vpop.f32.mrb[18].mxu1 }
0x162f   :  { %2047 = vrot.lane.b32.xlu0 %v2034_v1, %s2720_s27  ;;  %v2476_v43 = vpop.f32.mrb[19].mxu1  ;;  %v2039_v8 = vadd.f32 %v2034_v1, %v1459_v7 }
0x1631   :  { %v2379_v37 = vmul.f32 -1.442695, %v2039_v8 }
0x1633   :  { %2617 = vpow2.f32 %v2379_v37 }
0x163d   :  { %v2618_v9 = vpop.eup %2617 }
0x163e   :  { %v2043_v17 = vadd.f32 1.0, %v2618_v9 }
0x1640   :  { %2619 = vrcp.f32 %v2043_v17 }
0x164a   :  { %v2620_v10 = vpop.eup %2619 }
0x164b   :  { %v2057_v15 = vsub.f32 1.0, %v2620_v10  ;;  %v2063_v36 = vmul.f32 %v2620_v10, %v1991_v60 }
0x16a1   :  { %v2048_v11 = vpop.permute.xlu0 %2047 }
0x16a2   :  { %v2050_v51 = vmul.f32 %v2620_v10, %v2048_v11 }
0x16a4   :  { %2052 = vrot.lane.b32.xlu1 %v2050_v51, %s2720_s27 }
0x16a8   :  { %2073 = vrot.lane.b32.xlu1 %v2380_v12, %s2714_s14 }
0x1716   :  { %v2053_v16 = vpop.permute.xlu1 %2052 }
0x1717   :  { %v2055_v59 = vadd.f32 %v2053_v16, %v1459_v7 }
0x1719   :  { %2621 = vtanh.f32 %v2055_v59 }
0x171a   :  { %v2074_v61 = vpop.permute.xlu1 %2073 }
0x1723   :  { %v2622_v46 = vpop.eup %2621 }
0x1724   :  { %2059 = vrot.lane.b32.xlu0 %v2622_v46, %s2721_s5 }
0x1728   :  { %2082 = vrot.lane.b32.xlu0 %v2381_v33, %s2714_s14 }
0x1796   :  { %v2060_v19 = vpop.permute.xlu0 %2059 }
0x1797   :  { %v2062_v58 = vmul.f32 %v2060_v19, %v2057_v15 }
0x1799   :  { %v2064_v20 = vadd.f32 %v2063_v36, %v2062_v58 }
0x179a   :  { %v2083_v21 = vpop.permute.xlu0 %2082 }
0x179b   :  { %v2076_v22 = vmul.f32 %v2074_v61, %v2064_v20 }
0x179d   :  { %v2085_v23 = vadd.f32 %v2083_v21, %v2076_v22 }
0x179f   :  { %vm2086_vm8 = vcmp.ge.f32.partialorder %v2085_v23, 0.0  ;;  %v2088_v24 = vmul.f32 %v2087_v18, %v2085_v23 }
0x17a1   :  { %v2089_v45 = vsel %vm2086_vm8, %v2085_v23, %v2088_v24 }
0x17a2   :  { %v2090_v25 = vpack.c.bf16 %v2089_v45, %v2089_v45 }
0x17a4   :  { %2100 = vrot.lane.b32.xlu1 %v2090_v25, %s2721_s5 }
0x1816   :  { %v2101_v34 = vpop.permute.xlu1 %2100 }
0x1817   :  { %2482 = vmatmul.mubr.msk.bf16.vlgmr.msra.gmra.mrb[36].mxu0 %vm1484_vm7, %v2101_v34 }
0x18ea   :  { %v2151_v27 = vpop.f32.mrb[36].mxu0 }
0x18eb   :  { %v2152_v29 = vadd.f32 %v2382_v26, %v2151_v27  ;;  %v2483_v30 = vpop.f32.mrb[37].mxu0 }
0x18ec   :  { %v2154_v31 = vpop.f32.mrb[38].mxu0 }
0x18ed   :  { %v2159_v39 = vmul.f32 %v2158_v28, %v2152_v29  ;;  %v2484_v32 = vpop.f32.mrb[39].mxu0  ;;  %vm2157_vm9 = vcmp.ge.f32.partialorder %v2152_v29, 0.0 }
0x18ef   :  { %v2160_v55 = vsel %vm2157_vm9, %v2152_v29, %v2159_v39 }
0x18f0   :  { %2162 = vst.msk [vmem:[#allocation9] sm:$0xff] %vm2161_vm10, %v2160_v55 }
0x18f1   :  { %2690 = shalt.err (!%p2687_p11)
}
0x18f2   :  { %s2691_s23 = scalar_lea.hbm %s3135_s10, 128 }
0x18f3   :  { %p2692_p12 = scmp.ne.s32.totalorder %s3135_s10, %s2691_s23  ;;  %p2695_p13 = scmp.lt.u32.totalorder %s2691_s23, %s3135_s10 }
0x18f5   :  { %p2697_p0 = pnand %p2695_p13, %p2692_p12 }
0x18f7   :  { %2700 = shalt.err (!%p2697_p0)
}
0x18f8   :  { %2172 = dma.vmem_to_hbm [thread:$0]  %s2170_s21, 128, %s3135_s10, [#allocation4]  }
0x18f9   :  { %2707 = dma.done.wait [#allocation4], 128  }
0x18fa   :  { %2708 = vsyncadd [#allocation4], 4294967168 }
0x18fb   :  { %2176 = vsyncpa [#allocation3], 1 }
0x18fc   :  { %2177 = vsyncpa [#allocation7], 1 }
0x18fd   :  { %2178 = vsyncpa [#allocation4], 1 }
0x18fe   :  { %2179 = vsyncpa [#allocation5], 1 }

</bundles_post_ra>
